<compile_context>
chip_gen: v6e
topology: v6e:2x2x1
jax: 0.10.0
libtpu: 0.0.40
codegen_flags: <defaults>
</compile_context>

<pallas_src>
import jax
import jax.numpy as jnp
from jax.experimental import pallas as pl
from jax.experimental.pallas import tpu as pltpu

D_IN = 784       # input / output feature dim (kept unpadded: 784 % 8 == 0)
D_HID = 500      # logical hidden dim
D_HID_PAD = 512  # 4 * 128 (lane-dense hidden dim)


def _round_up(x, m):
    return (x + m - 1) // m * m


def _autoencoder_kernel(x_ref, w1_ref, b1_ref, w2_ref, b2_ref, o_ref):
    # In-kernel f32 -> bf16 cast of activations (free VPU work under the MXU).
    x = x_ref[...].astype(jnp.bfloat16)
    # encoder: Linear(784, 500) + ReLU   (bf16 MXU, f32 accumulate)
    h = jnp.dot(x, w1_ref[...], preferred_element_type=jnp.float32)
    h = jnp.maximum(h + b1_ref[...], 0.0)             # fused bias + ReLU
    # decoder: Linear(500, 784) + ReLU
    y = jnp.dot(h.astype(jnp.bfloat16), w2_ref[...],
                preferred_element_type=jnp.float32)
    o_ref[...] = jnp.maximum(y + b2_ref[...], 0.0).astype(o_ref.dtype)


def prepare_params(w1, b1, w2, b2):
    """One-time cast/pad of parameters (call at parameter-load time, not per step).

    Weights are (in, out) so the kernel computes x @ W + b (== PyTorch
    x @ W.T with W of shape (out, in)).  Only the hidden dim is padded
    (500 -> 512); zero padding is numerically exact for matmul + bias + ReLU.
    """
    w1_p = jnp.zeros((D_IN, D_HID_PAD), jnp.bfloat16)
    w1_p = w1_p.at[:, :D_HID].set(w1.astype(jnp.bfloat16))
    b1_p = jnp.zeros((1, D_HID_PAD), jnp.float32).at[:, :D_HID].set(
        b1.reshape(1, D_HID))
    w2_p = jnp.zeros((D_HID_PAD, D_IN), jnp.bfloat16)
    w2_p = w2_p.at[:D_HID, :].set(w2.astype(jnp.bfloat16))
    b2_p = b2.reshape(1, D_IN).astype(jnp.float32)
    return w1_p, b1_p, w2_p, b2_p


def autoencoder_forward(x, w1_p, b1_p, w2_p, b2_p, *, tile_b_max=1024):
    """x: (B, 784) f32 -> (B, 784) f32.  Params must come from prepare_params."""
    B = x.shape[0]

    # Batch tile: multiple of 8 (sublane), capped at tile_b_max.
    tile_b = min(tile_b_max, _round_up(B, 8))
    b_pad = _round_up(B, tile_b)
    if b_pad != B:
        x = jnp.pad(x, ((0, b_pad - B), (0, 0)))   # only when B % tile_b != 0

    grid = (b_pad // tile_b,)

    out = pl.pallas_call(
        _autoencoder_kernel,
        out_shape=jax.ShapeDtypeStruct((b_pad, D_IN), jnp.float32),
        grid_spec=pltpu.PrefetchScalarGridSpec(
            num_scalar_prefetch=0,
            grid=grid,
            in_specs=[
                # activations: tiled over batch (double-buffered by Pallas)
                pl.BlockSpec((tile_b, D_IN), lambda i: (i, 0)),
                # weights / biases: constant block -> VMEM-resident, fetched
                # once, single-buffered (default double buffer is wasted VMEM)
                pl.BlockSpec((D_IN, D_HID_PAD), lambda i: (0, 0),
                             pipeline_mode=pl.Buffered(1)),
                pl.BlockSpec((1, D_HID_PAD), lambda i: (0, 0),
                             pipeline_mode=pl.Buffered(1)),
                pl.BlockSpec((D_HID_PAD, D_IN), lambda i: (0, 0),
                             pipeline_mode=pl.Buffered(1)),
                pl.BlockSpec((1, D_IN), lambda i: (0, 0),
                             pipeline_mode=pl.Buffered(1)),
            ],
            out_specs=pl.BlockSpec((tile_b, D_IN), lambda i: (i, 0)),
        ),
        compiler_params=pltpu.CompilerParams(
            dimension_semantics=("parallel",),   # batch axis: megacore-shardable
            vmem_limit_bytes=48 << 20,           # tile_b=1024 fits on v5e/v6e/v7x
        ),
    )(x, w1_p, b1_p, w2_p, b2_p)

    # Only batch padding (if any) is trimmed; no feature-dim slice anymore.
    return out if b_pad == B else out[:B]


def init_params(key):
    """Deterministic init matching nn.Linear's default U(-1/sqrt(fan_in), +)."""
    k1, k2, k3, k4 = jax.random.split(key, 4)
    bound1 = 1.0 / jnp.sqrt(784.0)
    bound2 = 1.0 / jnp.sqrt(500.0)
    w1 = jax.random.uniform(k1, (784, 500), jnp.float32, -bound1, bound1)
    b1 = jax.random.uniform(k2, (1, 500), jnp.float32, -bound1, bound1)
    w2 = jax.random.uniform(k3, (500, 784), jnp.float32, -bound2, bound2)
    b2 = jax.random.uniform(k4, (1, 784), jnp.float32, -bound2, bound2)
    return w1, b1, w2, b2


if __name__ == "__main__":
    key = jax.random.PRNGKey(0)
    kx, kp = jax.random.split(key)

    B = 8  # small batch; feature dims fixed by the module
    x = jax.random.normal(kx, (B, 784), jnp.float32)
    w1, b1, w2, b2 = init_params(kp)

    # One-time parameter preparation (cached across forwards).
    w1_p, b1_p, w2_p, b2_p = prepare_params(w1, b1, w2, b2)

    out = autoencoder_forward(x, w1_p, b1_p, w2_p, b2_p)
    out = jax.block_until_ready(out)
    assert out.shape == (B, 784)

    # Reference with matching bf16 matmul inputs / f32 accumulation.
    h_ref = jnp.maximum(
        jnp.dot(x.astype(jnp.bfloat16), w1.astype(jnp.bfloat16),
                preferred_element_type=jnp.float32) + b1, 0.0)
    ref = jnp.maximum(
        jnp.dot(h_ref.astype(jnp.bfloat16), w2.astype(jnp.bfloat16),
                preferred_element_type=jnp.float32) + b2, 0.0)
    assert jnp.allclose(out, ref, atol=1e-2, rtol=1e-2)

    # Loose check against the pure-f32 PyTorch-equivalent forward (bf16 error).
    ref_f32 = jnp.maximum(jnp.maximum(x @ w1 + b1, 0.0) @ w2 + b2, 0.0)
    assert jnp.allclose(out, ref_f32, atol=5e-2, rtol=5e-2)

    print("KERNEL_OK")
</pallas_src>

<mosaic_0001>
module attributes {stable_mosaic.version = 11 : i64} {
  func.func @_autoencoder_kernel(%arg0: i32, %arg1: memref<8x784xf32, #tpu.memory_space<vmem>>, %arg2: memref<784x512xbf16, #tpu.memory_space<vmem>>, %arg3: memref<1x512xf32, #tpu.memory_space<vmem>>, %arg4: memref<512x784xbf16, #tpu.memory_space<vmem>>, %arg5: memref<1x784xf32, #tpu.memory_space<vmem>>, %arg6: memref<8x784xf32, #tpu.memory_space<vmem>>) attributes {dimension_semantics = [#tpu.dimension_semantics<parallel>], iteration_bounds = array<i64: 1>, scalar_prefetch = 0 : i64, scratch_operands = 0 : i64, tpu.core_type = #tpu.core_type<tc>, window_params = [{transform_indices = @transform_0, window_bounds = array<i64: 8, 784>}, {pipeline_mode = #tpu.pipeline_mode<synchronous>, transform_indices = @transform_1, window_bounds = array<i64: 784, 512>}, {pipeline_mode = #tpu.pipeline_mode<synchronous>, transform_indices = @transform_2, window_bounds = array<i64: 1, 512>}, {pipeline_mode = #tpu.pipeline_mode<synchronous>, transform_indices = @transform_3, window_bounds = array<i64: 512, 784>}, {pipeline_mode = #tpu.pipeline_mode<synchronous>, transform_indices = @transform_4, window_bounds = array<i64: 1, 784>}, {transform_indices = @transform_5, window_bounds = array<i64: 8, 784>}]} {
    %c0 = arith.constant 0 : index
    %c0_0 = arith.constant 0 : index
    %0 = vector.load %arg1[%c0, %c0_0] : memref<8x784xf32, #tpu.memory_space<vmem>>, vector<8x784xf32>
    %1 = arith.truncf %0 : vector<8x784xf32> to vector<8x784xbf16>
    %c0_1 = arith.constant 0 : index
    %c0_2 = arith.constant 0 : index
    %2 = vector.load %arg2[%c0_1, %c0_2] : memref<784x512xbf16, #tpu.memory_space<vmem>>, vector<784x512xbf16>
    %cst = arith.constant dense<0.000000e+00> : vector<8x512xf32>
    %3 = tpu.matmul %1, %2, %cst {dimension_numbers = #tpu.dot_dimension_numbers<[1], [0], [0], [1], [0, 0, 1, 1], [], []>} : vector<8x784xbf16>, vector<784x512xbf16>, vector<8x512xf32> -> vector<8x512xf32>
    %c0_3 = arith.constant 0 : index
    %c0_4 = arith.constant 0 : index
    %4 = vector.load %arg3[%c0_3, %c0_4] : memref<1x512xf32, #tpu.memory_space<vmem>>, vector<1x512xf32>
    %5 = vector.broadcast %4 : vector<1x512xf32> to vector<8x512xf32>
    %6 = arith.addf %3, %5 : vector<8x512xf32>
    %cst_5 = arith.constant 0.000000e+00 : f32
    %7 = vector.broadcast %cst_5 : f32 to vector<8x512xf32>
    %8 = arith.maximumf %6, %7 : vector<8x512xf32>
    %9 = arith.truncf %8 : vector<8x512xf32> to vector<8x512xbf16>
    %c0_6 = arith.constant 0 : index
    %c0_7 = arith.constant 0 : index
    %10 = vector.load %arg4[%c0_6, %c0_7] : memref<512x784xbf16, #tpu.memory_space<vmem>>, vector<512x784xbf16>
    %cst_8 = arith.constant dense<0.000000e+00> : vector<8x784xf32>
    %11 = tpu.matmul %9, %10, %cst_8 {dimension_numbers = #tpu.dot_dimension_numbers<[1], [0], [0], [1], [0, 0, 1, 1], [], []>} : vector<8x512xbf16>, vector<512x784xbf16>, vector<8x784xf32> -> vector<8x784xf32>
    %c0_9 = arith.constant 0 : index
    %c0_10 = arith.constant 0 : index
    %12 = vector.load %arg5[%c0_9, %c0_10] : memref<1x784xf32, #tpu.memory_space<vmem>>, vector<1x784xf32>
    %13 = vector.broadcast %12 : vector<1x784xf32> to vector<8x784xf32>
    %14 = arith.addf %11, %13 : vector<8x784xf32>
    %cst_11 = arith.constant 0.000000e+00 : f32
    %15 = vector.broadcast %cst_11 : f32 to vector<8x784xf32>
    %16 = arith.maximumf %14, %15 : vector<8x784xf32>
    %c0_12 = arith.constant 0 : index
    %c0_13 = arith.constant 0 : index
    %17 = vector.load %arg6[%c0_12, %c0_13] : memref<8x784xf32, #tpu.memory_space<vmem>>, vector<8x784xf32>
    tpu.vector_store %arg6[%c0_12, %c0_13], %16 {strides = array<i32>} : memref<8x784xf32, #tpu.memory_space<vmem>>, vector<8x784xf32>,
    return
  }
  func.func @transform_0(%arg0: i32) -> (i32, i32) {
    %c0_i32 = arith.constant 0 : i32
    %c0_i32_0 = arith.constant 0 : i32
    return %arg0, %c0_i32 : i32, i32
  }
  func.func @transform_1(%arg0: i32) -> (i32, i32) {
    %c0_i32 = arith.constant 0 : i32
    %c0_i32_0 = arith.constant 0 : i32
    %c0_i32_1 = arith.constant 0 : i32
    return %c0_i32, %c0_i32_0 : i32, i32
  }
  func.func @transform_2(%arg0: i32) -> (i32, i32) {
    %c0_i32 = arith.constant 0 : i32
    %c0_i32_0 = arith.constant 0 : i32
    %c0_i32_1 = arith.constant 0 : i32
    return %c0_i32, %c0_i32_0 : i32, i32
  }
  func.func @transform_3(%arg0: i32) -> (i32, i32) {
    %c0_i32 = arith.constant 0 : i32
    %c0_i32_0 = arith.constant 0 : i32
    %c0_i32_1 = arith.constant 0 : i32
    return %c0_i32, %c0_i32_0 : i32, i32
  }
  func.func @transform_4(%arg0: i32) -> (i32, i32) {
    %c0_i32 = arith.constant 0 : i32
    %c0_i32_0 = arith.constant 0 : i32
    %c0_i32_1 = arith.constant 0 : i32
    return %c0_i32, %c0_i32_0 : i32, i32
  }
  func.func @transform_5(%arg0: i32) -> (i32, i32) {
    %c0_i32 = arith.constant 0 : i32
    %c0_i32_0 = arith.constant 0 : i32
    return %arg0, %c0_i32 : i32, i32
  }
}

</mosaic_0001>

<bundles_post_ra>
// kernel: tpu_custom_call.1
= control target key start
LH: loop header
LB: loop body
LE: loop exit
PB: predicated region body
PF: predicated region fallthrough
CT: control target
= control target key end

     0   :  { %vm1234_vm0 = vcmask 130048   ;;  %s5893_s0 = inlined_call_operand.vmem [shape: f32[8,784], index: 0, kind: input, shape index: {}]   ;;  %s5894_s1 = inlined_call_operand.vmem [shape: bf16[784,512], index: 1, kind: input, shape index: {}]   ;;  %s5895_s2 = inlined_call_operand.vmem [shape: f32[1,512], index: 2, kind: input, shape index: {}]   ;;  %s5896_s3 = inlined_call_operand.vmem [shape: bf16[512,784], index: 3, kind: input, shape index: {}]   ;;  %s5897_s4 = inlined_call_operand.vmem [shape: f32[1,784], index: 4, kind: input, shape index: {}]   ;;  %s5898_s5 = inlined_call_operand.hbm [shape: f32[8,784], index: 5, kind: output, shape index: {}]  }
   0x1   :  { %v3841_v0 = vld [vmem:[%s5894_s1 + $0xe4] ss:$16 sps:$4 sm:$0xff]   ;;  %v3845_v2 = vld [vmem:[%s5894_s1 + $0xe0] ss:$16 sps:$4 sm:$0xff]   ;;  %v23_v46 = vld [vmem:[%s5893_s0 + $0x8] sm:$0xff] }
   0x2   :  { %v3843_v1 = vld [vmem:[%s5894_s1 + $0x2e4] ss:$16 sps:$4 sm:$0xff]   ;;  %1238 = vmatprep.subr.bf16.mxu0 %v3841_v0  ;;  %v3846_v3 = vld [vmem:[%s5894_s1 + $0x2e0] ss:$16 sps:$4 sm:$0xff]   ;;  %v4656_v49 = vpack.c.bf16 %v23_v46, %v23_v46  ;;  %v25_v50 = vld [vmem:[%s5893_s0 + $0x18] sm:$0xff] }
   0x3   :  { %1279 = vmatprep.subr.bf16.mxu1 %v3843_v1  ;;  %v3847_v4 = vld [vmem:[%s5894_s1 + $0xc4] ss:$16 sps:$4 sm:$0xff]   ;;  %1239 = vmatpush1.bf16.msra.mxu0 %v3845_v2  ;;  %v3851_v6 = vld [vmem:[%s5894_s1 + $0xc0] ss:$16 sps:$4 sm:$0xff]   ;;  %v4664_v52 = vpack.c.bf16 %v25_v50, %v25_v50 }
   0x4   :  { %1280 = vmatpush1.bf16.msra.mxu1 %v3846_v3  ;;  %v3849_v5 = vld [vmem:[%s5894_s1 + $0x2c4] ss:$16 sps:$4 sm:$0xff]   ;;  %1240 = vmatprep.subr.bf16.mxu0 %v3847_v4  ;;  %v3852_v7 = vld [vmem:[%s5894_s1 + $0x2c0] ss:$16 sps:$4 sm:$0xff]  }
   0x5   :  { %1281 = vmatprep.subr.bf16.mxu1 %v3849_v5  ;;  %v3853_v8 = vld [vmem:[%s5894_s1 + $0xa4] ss:$16 sps:$4 sm:$0xff]   ;;  %v3857_v10 = vld [vmem:[%s5894_s1 + $0xa0] ss:$16 sps:$4 sm:$0xff]   ;;  %1270 = vmatprep.mubr.bf16.mxu0 %v4656_v49 }
   0x6   :  { %v3855_v9 = vld [vmem:[%s5894_s1 + $0x2a4] ss:$16 sps:$4 sm:$0xff]   ;;  %v3858_v11 = vld [vmem:[%s5894_s1 + $0x2a0] ss:$16 sps:$4 sm:$0xff]   ;;  %1311 = vmatprep.mubr.bf16.mxu1 %v4664_v52 }
   0x7   :  { %1241 = vmatpush1.bf16.msra.mxu0 %v3851_v6  ;;  %v3859_v12 = vld [vmem:[%s5894_s1 + $0x84] ss:$16 sps:$4 sm:$0xff]   ;;  %v3863_v14 = vld [vmem:[%s5894_s1 + $0x80] ss:$16 sps:$4 sm:$0xff]  }
   0x8   :  { %1282 = vmatpush1.bf16.msra.mxu1 %v3852_v7  ;;  %1242 = vmatprep.subr.bf16.mxu0 %v3853_v8  ;;  %v3861_v13 = vld [vmem:[%s5894_s1 + $0x284] ss:$16 sps:$4 sm:$0xff]   ;;  %v3864_v15 = vld [vmem:[%s5894_s1 + $0x280] ss:$16 sps:$4 sm:$0xff]  }
   0x9   :  { %1283 = vmatprep.subr.bf16.mxu1 %v3855_v9  ;;  %v3865_v16 = vld [vmem:[%s5894_s1 + $0x64] ss:$16 sps:$4 sm:$0xff]   ;;  %v3869_v18 = vld [vmem:[%s5894_s1 + $0x60] ss:$16 sps:$4 sm:$0xff]  }
   0xa   :  { %v3867_v17 = vld [vmem:[%s5894_s1 + $0x264] ss:$16 sps:$4 sm:$0xff]   ;;  %v3870_v19 = vld [vmem:[%s5894_s1 + $0x260] ss:$16 sps:$4 sm:$0xff]  }
   0xb   :  { %1243 = vmatpush1.bf16.msra.mxu0 %v3857_v10  ;;  %v3871_v20 = vld [vmem:[%s5894_s1 + $0x44] ss:$16 sps:$4 sm:$0xff]   ;;  %v3875_v22 = vld [vmem:[%s5894_s1 + $0x40] ss:$16 sps:$4 sm:$0xff]  }
   0xc   :  { %1284 = vmatpush1.bf16.msra.mxu1 %v3858_v11  ;;  %1244 = vmatprep.subr.bf16.mxu0 %v3859_v12  ;;  %v3873_v21 = vld [vmem:[%s5894_s1 + $0x244] ss:$16 sps:$4 sm:$0xff]   ;;  %v3876_v23 = vld [vmem:[%s5894_s1 + $0x240] ss:$16 sps:$4 sm:$0xff]  }
   0xd   :  { %1285 = vmatprep.subr.bf16.mxu1 %v3861_v13  ;;  %v3877_v24 = vld [vmem:[%s5894_s1 + $0x24] ss:$16 sps:$4 sm:$0xff]   ;;  %v3881_v26 = vld [vmem:[%s5894_s1 + $0x20] ss:$16 sps:$4 sm:$0xff]   ;;  %v3948_v13 = vld [vmem:[%s5894_s1 + $0xec] ss:$16 sps:$4 sm:$0xff]  }
   0xe   :  { %v3879_v25 = vld [vmem:[%s5894_s1 + $0x224] ss:$16 sps:$4 sm:$0xff]   ;;  %v3882_v27 = vld [vmem:[%s5894_s1 + $0x220] ss:$16 sps:$4 sm:$0xff]  }
   0xf   :  { %1245 = vmatpush1.bf16.msra.mxu0 %v3863_v14  ;;  %v3883_v28 = vld [vmem:[%s5894_s1 + $0x4] ss:$16 sps:$4 sm:$0xff]   ;;  %v3887_v30 = vld [vmem:[%s5894_s1] ss:$16 sps:$4 sm:$0xff]  }
  0x10   :  { %1286 = vmatpush1.bf16.msra.mxu1 %v3864_v15  ;;  %1246 = vmatprep.subr.bf16.mxu0 %v3865_v16  ;;  %v3885_v29 = vld [vmem:[%s5894_s1 + $0x204] ss:$16 sps:$4 sm:$0xff]   ;;  %v3888_v31 = vld [vmem:[%s5894_s1 + $0x200] ss:$16 sps:$4 sm:$0xff]   ;;  %v4477_v16 = vmov 0  }
  0x11   :  { %1287 = vmatprep.subr.bf16.mxu1 %v3867_v17  ;;  %v3889_v32 = vld [vmem:[%s5894_s1 + $0x1e4] ss:$16 sps:$4 sm:$0xff]   ;;  %v3893_v34 = vld [vmem:[%s5894_s1 + $0x1e0] ss:$16 sps:$4 sm:$0xff]  }
  0x12   :  { %v3891_v33 = vld [vmem:[%s5894_s1 + $0x3e4] ss:$16 sps:$4 sm:$0xff]   ;;  %v3894_v35 = vld [vmem:[%s5894_s1 + $0x3e0] ss:$16 sps:$4 sm:$0xff]  }
  0x13   :  { %1247 = vmatpush1.bf16.msra.mxu0 %v3869_v18  ;;  %v3895_v36 = vld [vmem:[%s5894_s1 + $0x1c4] ss:$16 sps:$4 sm:$0xff]   ;;  %v3899_v38 = vld [vmem:[%s5894_s1 + $0x1c0] ss:$16 sps:$4 sm:$0xff]   ;;  %v3946_v18 = vld [vmem:[%s5894_s1 + $0xe8] ss:$16 sps:$4 sm:$0xff]  }
  0x14   :  { %1288 = vmatpush1.bf16.msra.mxu1 %v3870_v19  ;;  %1248 = vmatprep.subr.bf16.mxu0 %v3871_v20  ;;  %v3897_v37 = vld [vmem:[%s5894_s1 + $0x3c4] ss:$16 sps:$4 sm:$0xff]   ;;  %v3900_v39 = vld [vmem:[%s5894_s1 + $0x3c0] ss:$16 sps:$4 sm:$0xff]  }
  0x15   :  { %1289 = vmatprep.subr.bf16.mxu1 %v3873_v21  ;;  %v3901_v40 = vld [vmem:[%s5894_s1 + $0x1a4] ss:$16 sps:$4 sm:$0xff]   ;;  %v3905_v42 = vld [vmem:[%s5894_s1 + $0x1a0] ss:$16 sps:$4 sm:$0xff]   ;;  %v3954_v21 = vld [vmem:[%s5894_s1 + $0xcc] ss:$16 sps:$4 sm:$0xff]  }
  0x16   :  { %v3903_v41 = vld [vmem:[%s5894_s1 + $0x3a4] ss:$16 sps:$4 sm:$0xff]   ;;  %v3906_v43 = vld [vmem:[%s5894_s1 + $0x3a0] ss:$16 sps:$4 sm:$0xff]  }
  0x17   :  { %1249 = vmatpush1.bf16.msra.mxu0 %v3875_v22  ;;  %v3907_v44 = vld [vmem:[%s5894_s1 + $0x184] ss:$16 sps:$4 sm:$0xff]   ;;  %v3911_v47 = vld [vmem:[%s5894_s1 + $0x180] ss:$16 sps:$4 sm:$0xff]  }
  0x18   :  { %1290 = vmatpush1.bf16.msra.mxu1 %v3876_v23  ;;  %1250 = vmatprep.subr.bf16.mxu0 %v3877_v24  ;;  %v3909_v45 = vld [vmem:[%s5894_s1 + $0x384] ss:$16 sps:$4 sm:$0xff]   ;;  %v3912_v48 = vld [vmem:[%s5894_s1 + $0x380] ss:$16 sps:$4 sm:$0xff]   ;;  %v3952_v23 = vld [vmem:[%s5894_s1 + $0xc8] ss:$16 sps:$4 sm:$0xff]  }
  0x19   :  { %1291 = vmatprep.subr.bf16.mxu1 %v3879_v25  ;;  %v3913_v51 = vld [vmem:[%s5894_s1 + $0x164] ss:$16 sps:$4 sm:$0xff]   ;;  %v3917_v54 = vld [vmem:[%s5894_s1 + $0x160] ss:$16 sps:$4 sm:$0xff]   ;;  %v3960_v25 = vld [vmem:[%s5894_s1 + $0xac] ss:$16 sps:$4 sm:$0xff]  }
  0x1a   :  { %v3915_v53 = vld [vmem:[%s5894_s1 + $0x364] ss:$16 sps:$4 sm:$0xff]   ;;  %v3918_v55 = vld [vmem:[%s5894_s1 + $0x360] ss:$16 sps:$4 sm:$0xff]  }
  0x1b   :  { %1251 = vmatpush1.bf16.msra.mxu0 %v3881_v26  ;;  %v3919_v56 = vld [vmem:[%s5894_s1 + $0x144] ss:$16 sps:$4 sm:$0xff]   ;;  %v3923_v58 = vld [vmem:[%s5894_s1 + $0x140] ss:$16 sps:$4 sm:$0xff]  }
  0x1c   :  { %1292 = vmatpush1.bf16.msra.mxu1 %v3882_v27  ;;  %1252 = vmatprep.subr.bf16.mxu0 %v3883_v28  ;;  %v3921_v57 = vld [vmem:[%s5894_s1 + $0x344] ss:$16 sps:$4 sm:$0xff]   ;;  %v3924_v59 = vld [vmem:[%s5894_s1 + $0x340] ss:$16 sps:$4 sm:$0xff]   ;;  %v3958_v27 = vld [vmem:[%s5894_s1 + $0xa8] ss:$16 sps:$4 sm:$0xff]  }
  0x1d   :  { %1293 = vmatprep.subr.bf16.mxu1 %v3885_v29  ;;  %v3925_v60 = vld [vmem:[%s5894_s1 + $0x124] ss:$16 sps:$4 sm:$0xff]   ;;  %v3929_v62 = vld [vmem:[%s5894_s1 + $0x120] ss:$16 sps:$4 sm:$0xff]   ;;  %v3966_v29 = vld [vmem:[%s5894_s1 + $0x8c] ss:$16 sps:$4 sm:$0xff]  }
  0x1e   :  { %v3927_v61 = vld [vmem:[%s5894_s1 + $0x324] ss:$16 sps:$4 sm:$0xff]   ;;  %v3930_v63 = vld [vmem:[%s5894_s1 + $0x320] ss:$16 sps:$4 sm:$0xff]  }
  0x1f   :  { %1253 = vmatpush1.bf16.msra.mxu0 %v3887_v30  ;;  %v3931_v0 = vld [vmem:[%s5894_s1 + $0x104] ss:$16 sps:$4 sm:$0xff]   ;;  %v3935_v2 = vld [vmem:[%s5894_s1 + $0x100] ss:$16 sps:$4 sm:$0xff]  }
  0x20   :  { %1294 = vmatpush1.bf16.msra.mxu1 %v3888_v31  ;;  %1254 = vmatprep.subr.bf16.mxu0 %v3889_v32  ;;  %v3933_v1 = vld [vmem:[%s5894_s1 + $0x304] ss:$16 sps:$4 sm:$0xff]   ;;  %v3936_v3 = vld [vmem:[%s5894_s1 + $0x300] ss:$16 sps:$4 sm:$0xff]   ;;  %v3964_v31 = vld [vmem:[%s5894_s1 + $0x88] ss:$16 sps:$4 sm:$0xff]  }
  0x21   :  { %1295 = vmatprep.subr.bf16.mxu1 %v3891_v33  ;;  %v22_v4 = vld [vmem:[%s5893_s0] sm:$0xff]  ;;  %v24_v5 = vld [vmem:[%s5893_s0 + $0x10] sm:$0xff]  ;;  %v3972_v33 = vld [vmem:[%s5894_s1 + $0x6c] ss:$16 sps:$4 sm:$0xff]  }
  0x22   :  { %v3939_v6 = vld [vmem:[%s5894_s1 + $0x4e4] ss:$16 sps:$4 sm:$0xff]   ;;  %v4725_v8 = vpack.c.bf16 %v22_v4, %v22_v4  ;;  %v4727_v9 = vpack.c.bf16 %v24_v5, %v24_v5  ;;  %v3937_v10 = vld [vmem:[%s5894_s1 + $0x4e0] ss:$16 sps:$4 sm:$0xff]   ;;  %v4020_v4 = vld [vmem:[%s5894_s1 + $0x16c] ss:$16 sps:$4 sm:$0xff]  }
  0x23   :  { %1255 = vmatpush2.bf16.msra.mxu0 %v3893_v34  ;;  %v3942_v7 = vld [vmem:[%s5894_s1 + $0x604] ss:$16 sps:$4 sm:$0xff]   ;;  %v3940_v11 = vld [vmem:[%s5894_s1 + $0x600] ss:$16 sps:$4 sm:$0xff]  }
  0x24   :  { %1296 = vmatpush2.bf16.msra.mxu1 %v3894_v35  ;;  %1256 = vmatprep.subr.bf16.mxu0 %v3895_v36  ;;  %v3945_v12 = vld [vmem:[%s5894_s1 + $0x4c4] ss:$16 sps:$4 sm:$0xff]   ;;  %v3943_v14 = vld [vmem:[%s5894_s1 + $0x4c0] ss:$16 sps:$4 sm:$0xff]   ;;  %v27_v35 = vld [vmem:[%s5893_s0 + $0x28] sm:$0xff] }
  0x25   :  { %1297 = vmatprep.subr.bf16.mxu1 %v3897_v37  ;;  %v28_v15 = vld [vmem:[%s5893_s0 + $0x30] sm:$0xff]  ;;  %v4809_v36 = vpack.c.bf16 %v27_v35, %v27_v35  ;;  %v3970_v37 = vld [vmem:[%s5894_s1 + $0x68] ss:$16 sps:$4 sm:$0xff]  }
  0x26   :  { %v3951_v17 = vld [vmem:[%s5894_s1 + $0x4a4] ss:$16 sps:$4 sm:$0xff]   ;;  %v4756_v19 = vpack.c.bf16 %v28_v15, %v28_v15  ;;  %v3949_v20 = vld [vmem:[%s5894_s1 + $0x4a0] ss:$16 sps:$4 sm:$0xff]   ;;  %v4054_v35 = vld [vmem:[%s5894_s1 + $0x4a8] ss:$16 sps:$4 sm:$0xff]  }
  0x27   :  { %1257 = vmatpush2.bf16.msra.mxu0 %v3899_v38  ;;  %v3957_v22 = vld [vmem:[%s5894_s1 + $0x484] ss:$16 sps:$4 sm:$0xff]   ;;  %v3955_v24 = vld [vmem:[%s5894_s1 + $0x480] ss:$16 sps:$4 sm:$0xff]  }
  0x28   :  { %1298 = vmatpush2.bf16.msra.mxu1 %v3900_v39  ;;  %1258 = vmatprep.subr.bf16.mxu0 %v3901_v40  ;;  %v3963_v26 = vld [vmem:[%s5894_s1 + $0x464] ss:$16 sps:$4 sm:$0xff]   ;;  %v3961_v28 = vld [vmem:[%s5894_s1 + $0x460] ss:$16 sps:$4 sm:$0xff]   ;;  %v3978_v39 = vld [vmem:[%s5894_s1 + $0x4c] ss:$16 sps:$4 sm:$0xff]  }
  0x29   :  { %1299 = vmatprep.subr.bf16.mxu1 %v3903_v41  ;;  %v3969_v30 = vld [vmem:[%s5894_s1 + $0x444] ss:$16 sps:$4 sm:$0xff]   ;;  %v3967_v32 = vld [vmem:[%s5894_s1 + $0x440] ss:$16 sps:$4 sm:$0xff]   ;;  %v3976_v41 = vld [vmem:[%s5894_s1 + $0x48] ss:$16 sps:$4 sm:$0xff]  }
  0x2a   :  { %v3975_v34 = vld [vmem:[%s5894_s1 + $0x424] ss:$16 sps:$4 sm:$0xff]   ;;  %v3973_v38 = vld [vmem:[%s5894_s1 + $0x420] ss:$16 sps:$4 sm:$0xff]  }
  0x2b   :  { %1259 = vmatpush2.bf16.msra.mxu0 %v3905_v42  ;;  %v3981_v40 = vld [vmem:[%s5894_s1 + $0x404] ss:$16 sps:$4 sm:$0xff]   ;;  %v3979_v42 = vld [vmem:[%s5894_s1 + $0x400] ss:$16 sps:$4 sm:$0xff]  }
  0x2c   :  { %1300 = vmatpush2.bf16.msra.mxu1 %v3906_v43  ;;  %1260 = vmatprep.subr.bf16.mxu0 %v3907_v44  ;;  %v3984_v43 = vld [vmem:[%s5894_s1 + $0x2c] ss:$16 sps:$4 sm:$0xff]   ;;  %v3987_v44 = vld [vmem:[%s5894_s1 + $0x5e4] ss:$16 sps:$4 sm:$0xff]   ;;  %v3985_v46 = vld [vmem:[%s5894_s1 + $0x5e0] ss:$16 sps:$4 sm:$0xff]  }
  0x2d   :  { %1301 = vmatprep.subr.bf16.mxu1 %v3909_v45  ;;  %v3982_v45 = vld [vmem:[%s5894_s1 + $0x28] ss:$16 sps:$4 sm:$0xff]   ;;  %v3991_v50 = vld [vmem:[%s5894_s1 + $0x5c0] ss:$16 sps:$4 sm:$0xff]   ;;  %v4023_v5 = vld [vmem:[%s5894_s1 + $0x524] ss:$16 sps:$4 sm:$0xff]  }
  0x2e   :  { %v26_v15 = vld [vmem:[%s5893_s0 + $0x20] sm:$0xff] }
  0x2f   :  { %1261 = vmatpush2.bf16.msra.mxu0 %v3911_v47  ;;  %v3990_v47 = vld [vmem:[%s5894_s1 + $0xc] ss:$16 sps:$4 sm:$0xff]  }
  0x30   :  { %1302 = vmatpush2.bf16.msra.mxu1 %v3912_v48  ;;  %1262 = vmatprep.subr.bf16.mxu0 %v3913_v51  ;;  %v3993_v48 = vld [vmem:[%s5894_s1 + $0x5c4] ss:$16 sps:$4 sm:$0xff]   ;;  %v3996_v51 = vld [vmem:[%s5894_s1 + $0x1ec] ss:$16 sps:$4 sm:$0xff]  }
  0x31   :  { %1303 = vmatprep.subr.bf16.mxu1 %v3915_v53  ;;  %v3999_v53 = vld [vmem:[%s5894_s1 + $0x5a4] ss:$16 sps:$4 sm:$0xff]  }
  0x33   :  { %1263 = vmatpush2.bf16.msra.mxu0 %v3917_v54  ;;  %v3994_v54 = vld [vmem:[%s5894_s1 + $0x1e8] ss:$16 sps:$4 sm:$0xff]  }
  0x34   :  { %1304 = vmatpush2.bf16.msra.mxu1 %v3918_v55  ;;  %1264 = vmatprep.subr.bf16.mxu0 %v3919_v56  ;;  %v3997_v55 = vld [vmem:[%s5894_s1 + $0x5a0] ss:$16 sps:$4 sm:$0xff]   ;;  %v4002_v56 = vld [vmem:[%s5894_s1 + $0x1cc] ss:$16 sps:$4 sm:$0xff]  }
  0x35   :  { %1305 = vmatprep.subr.bf16.mxu1 %v3921_v57  ;;  %v4005_v57 = vld [vmem:[%s5894_s1 + $0x584] ss:$16 sps:$4 sm:$0xff]  }
  0x37   :  { %1265 = vmatpush2.bf16.msra.mxu0 %v3923_v58  ;;  %v4000_v58 = vld [vmem:[%s5894_s1 + $0x1c8] ss:$16 sps:$4 sm:$0xff]  }
  0x38   :  { %1306 = vmatpush2.bf16.msra.mxu1 %v3924_v59  ;;  %1266 = vmatprep.subr.bf16.mxu0 %v3925_v60  ;;  %v4003_v59 = vld [vmem:[%s5894_s1 + $0x580] ss:$16 sps:$4 sm:$0xff]   ;;  %v4008_v60 = vld [vmem:[%s5894_s1 + $0x1ac] ss:$16 sps:$4 sm:$0xff]  }
  0x39   :  { %1307 = vmatprep.subr.bf16.mxu1 %v3927_v61  ;;  %v4011_v61 = vld [vmem:[%s5894_s1 + $0x564] ss:$16 sps:$4 sm:$0xff]  }
  0x3b   :  { %1267 = vmatpush2.bf16.msra.mxu0 %v3929_v62  ;;  %v4006_v62 = vld [vmem:[%s5894_s1 + $0x1a8] ss:$16 sps:$4 sm:$0xff]  }
  0x3c   :  { %1308 = vmatpush2.bf16.msra.mxu1 %v3930_v63  ;;  %1268 = vmatprep.subr.bf16.mxu0 %v3931_v0  ;;  %v4009_v63 = vld [vmem:[%s5894_s1 + $0x560] ss:$16 sps:$4 sm:$0xff]   ;;  %v4014_v0 = vld [vmem:[%s5894_s1 + $0x18c] ss:$16 sps:$4 sm:$0xff]  }
  0x3d   :  { %1309 = vmatprep.subr.bf16.mxu1 %v3933_v1  ;;  %v4017_v1 = vld [vmem:[%s5894_s1 + $0x544] ss:$16 sps:$4 sm:$0xff]  }
  0x3f   :  { %1269 = vmatpush2.bf16.msra.mxu0 %v3935_v2  ;;  %v4012_v2 = vld [vmem:[%s5894_s1 + $0x188] ss:$16 sps:$4 sm:$0xff]  }
  0x40   :  { %1310 = vmatpush2.bf16.msra.mxu1 %v3936_v3  ;;  %1320 = vmatprep.subr.bf16.mxu0 %v3939_v6  ;;  %v4015_v3 = vld [vmem:[%s5894_s1 + $0x540] ss:$16 sps:$4 sm:$0xff]   ;;  %v4018_v6 = vld [vmem:[%s5894_s1 + $0x168] ss:$16 sps:$4 sm:$0xff]  }
  0x41   :  { %1375 = vmatprep.subr.bf16.mxu1 %v3942_v7  ;;  %v4021_v7 = vld [vmem:[%s5894_s1 + $0x520] ss:$16 sps:$4 sm:$0xff]  }
  0x42   :  { %1271 = vmatmul.mubr.bf16.vlgmr.msra.gmra.mxu0 %v4725_v8 }
  0x43   :  { %1312 = vmatmul.mubr.bf16.vlgmr.msra.gmra.mxu1 %v4727_v9  ;;  %1321 = vmatpush1.bf16.msra.mxu0 %v3937_v10  ;;  %v4026_v10 = vld [vmem:[%s5894_s1 + $0x14c] ss:$16 sps:$4 sm:$0xff]  }
  0x44   :  { %1376 = vmatpush1.bf16.msra.mxu1 %v3940_v11  ;;  %1322 = vmatprep.subr.bf16.mxu0 %v3945_v12  ;;  %v4029_v11 = vld [vmem:[%s5894_s1 + $0x504] ss:$16 sps:$4 sm:$0xff]   ;;  %v4024_v12 = vld [vmem:[%s5894_s1 + $0x148] ss:$16 sps:$4 sm:$0xff]  }
  0x45   :  { %1393 = vmatprep.mubr.bf16.mxu1 %v4477_v16  ;;  %1402 = vmatprep.subr.bf16.mxu1 %v3948_v13  ;;  %v4027_v13 = vld [vmem:[%s5894_s1 + $0x500] ss:$16 sps:$4 sm:$0xff]  }
  0x46   :  { %1352 = vmatprep.mubr.bf16.mxu0 %v4809_v36 }
  0x47   :  { %1323 = vmatpush1.bf16.msra.mxu0 %v3943_v14  ;;  %v4032_v14 = vld [vmem:[%s5894_s1 + $0x12c] ss:$16 sps:$4 sm:$0xff]  }
  0x48   :  { %1324 = vmatprep.subr.bf16.mxu0 %v3951_v17  ;;  %v4035_v17 = vld [vmem:[%s5894_s1 + $0x2ec] ss:$16 sps:$4 sm:$0xff]  }
  0x4b   :  { %3569 = vmatmul.mubr.msk.bf16.vlgmr.msra.gmra.mxu1 %vm1234_vm0, %v4756_v19  ;;  %1325 = vmatpush1.bf16.msra.mxu0 %v3949_v20  ;;  %v4938_v20 = vpack.c.bf16 %v26_v15, %v26_v15  ;;  %v4122_v15 = vld [vmem:[%s5894_s1 + $0x54c] ss:$16 sps:$4 sm:$0xff]  }
  0x4c   :  { %1403 = vmatpush1.bf16.msra.mxu1 %v3946_v18  ;;  %1326 = vmatprep.subr.bf16.mxu0 %v3957_v22  ;;  %v4030_v18 = vld [vmem:[%s5894_s1 + $0x128] ss:$16 sps:$4 sm:$0xff]   ;;  %v4038_v22 = vld [vmem:[%s5894_s1 + $0x10c] ss:$16 sps:$4 sm:$0xff]  }
  0x4d   :  { %1404 = vmatprep.subr.bf16.mxu1 %v3954_v21  ;;  %1434 = vmatprep.mubr.bf16.mxu1 %v4656_v49  ;;  %v3988_v49 = vld [vmem:[%s5894_s1 + $0x8] ss:$16 sps:$4 sm:$0xff]  }
  0x4e   :  { %v4033_v21 = vld [vmem:[%s5894_s1 + $0x2e8] ss:$16 sps:$4 sm:$0xff]  }
  0x4f   :  { %1327 = vmatpush1.bf16.msra.mxu0 %v3955_v24  ;;  %v4036_v24 = vld [vmem:[%s5894_s1 + $0x108] ss:$16 sps:$4 sm:$0xff]  }
  0x50   :  { %1405 = vmatpush1.bf16.msra.mxu1 %v3952_v23  ;;  %1328 = vmatprep.subr.bf16.mxu0 %v3963_v26  ;;  %v4041_v23 = vld [vmem:[%s5894_s1 + $0x2cc] ss:$16 sps:$4 sm:$0xff]  }
  0x51   :  { %1406 = vmatprep.subr.bf16.mxu1 %v3960_v25  ;;  %v4039_v25 = vld [vmem:[%s5894_s1 + $0x2c8] ss:$16 sps:$4 sm:$0xff]   ;;  %v4044_v26 = vld [vmem:[%s5894_s1 + $0x4ec] ss:$16 sps:$4 sm:$0xff]  }
  0x53   :  { %1329 = vmatpush1.bf16.msra.mxu0 %v3961_v28  ;;  %v4042_v28 = vld [vmem:[%s5894_s1 + $0x4e8] ss:$16 sps:$4 sm:$0xff]  }
  0x54   :  { %1407 = vmatpush1.bf16.msra.mxu1 %v3958_v27  ;;  %1330 = vmatprep.subr.bf16.mxu0 %v3969_v30  ;;  %v4047_v27 = vld [vmem:[%s5894_s1 + $0x2ac] ss:$16 sps:$4 sm:$0xff]  }
  0x55   :  { %1408 = vmatprep.subr.bf16.mxu1 %v3966_v29  ;;  %v4045_v29 = vld [vmem:[%s5894_s1 + $0x2a8] ss:$16 sps:$4 sm:$0xff]   ;;  %v4050_v30 = vld [vmem:[%s5894_s1 + $0x4cc] ss:$16 sps:$4 sm:$0xff]  }
  0x57   :  { %1331 = vmatpush1.bf16.msra.mxu0 %v3967_v32  ;;  %v4048_v32 = vld [vmem:[%s5894_s1 + $0x4c8] ss:$16 sps:$4 sm:$0xff]  }
  0x58   :  { %1409 = vmatpush1.bf16.msra.mxu1 %v3964_v31  ;;  %1332 = vmatprep.subr.bf16.mxu0 %v3975_v34  ;;  %v4053_v31 = vld [vmem:[%s5894_s1 + $0x28c] ss:$16 sps:$4 sm:$0xff]  }
  0x59   :  { %1410 = vmatprep.subr.bf16.mxu1 %v3972_v33  ;;  %v4056_v33 = vld [vmem:[%s5894_s1 + $0x4ac] ss:$16 sps:$4 sm:$0xff]  }
  0x5a   :  { %v4059_v34 = vld [vmem:[%s5894_s1 + $0x26c] ss:$16 sps:$4 sm:$0xff]  }
  0x5b   :  { %1333 = vmatpush1.bf16.msra.mxu0 %v3973_v38  ;;  %v4065_v38 = vld [vmem:[%s5894_s1 + $0x24c] ss:$16 sps:$4 sm:$0xff]  }
  0x5c   :  { %1411 = vmatpush1.bf16.msra.mxu1 %v3970_v37  ;;  %1334 = vmatprep.subr.bf16.mxu0 %v3981_v40  ;;  %v4062_v37 = vld [vmem:[%s5894_s1 + $0x48c] ss:$16 sps:$4 sm:$0xff]  }
  0x5d   :  { %1412 = vmatprep.subr.bf16.mxu1 %v3978_v39  ;;  %v4060_v39 = vld [vmem:[%s5894_s1 + $0x488] ss:$16 sps:$4 sm:$0xff]   ;;  %v4068_v40 = vld [vmem:[%s5894_s1 + $0x46c] ss:$16 sps:$4 sm:$0xff]  }
  0x5f   :  { %1335 = vmatpush1.bf16.msra.mxu0 %v3979_v42  ;;  %v4066_v42 = vld [vmem:[%s5894_s1 + $0x468] ss:$16 sps:$4 sm:$0xff]  }
  0x60   :  { %1413 = vmatpush1.bf16.msra.mxu1 %v3976_v41  ;;  %1336 = vmatprep.subr.bf16.mxu0 %v3987_v44  ;;  %v4071_v41 = vld [vmem:[%s5894_s1 + $0x22c] ss:$16 sps:$4 sm:$0xff]  }
  0x61   :  { %1414 = vmatprep.subr.bf16.mxu1 %v3984_v43  ;;  %v4069_v43 = vld [vmem:[%s5894_s1 + $0x228] ss:$16 sps:$4 sm:$0xff]   ;;  %v4074_v44 = vld [vmem:[%s5894_s1 + $0x44c] ss:$16 sps:$4 sm:$0xff]  }
  0x63   :  { %1337 = vmatpush2.bf16.msra.mxu0 %v3985_v46  ;;  %v4072_v46 = vld [vmem:[%s5894_s1 + $0x448] ss:$16 sps:$4 sm:$0xff]  }
  0x64   :  { %1415 = vmatpush1.bf16.msra.mxu1 %v3982_v45  ;;  %1338 = vmatprep.subr.bf16.mxu0 %v3993_v48  ;;  %v4077_v45 = vld [vmem:[%s5894_s1 + $0x20c] ss:$16 sps:$4 sm:$0xff]  }
  0x65   :  { %1416 = vmatprep.subr.bf16.mxu1 %v3990_v47  ;;  %v4075_v47 = vld [vmem:[%s5894_s1 + $0x208] ss:$16 sps:$4 sm:$0xff]   ;;  %v4080_v48 = vld [vmem:[%s5894_s1 + $0x42c] ss:$16 sps:$4 sm:$0xff]  }
  0x67   :  { %1339 = vmatpush2.bf16.msra.mxu0 %v3991_v50  ;;  %v4078_v50 = vld [vmem:[%s5894_s1 + $0x428] ss:$16 sps:$4 sm:$0xff]  }
  0x68   :  { %1417 = vmatpush1.bf16.msra.mxu1 %v3988_v49  ;;  %1340 = vmatprep.subr.bf16.mxu0 %v3999_v53  ;;  %v4083_v49 = vld [vmem:[%s5894_s1 + $0x3ec] ss:$16 sps:$4 sm:$0xff]  }
  0x69   :  { %1418 = vmatprep.subr.bf16.mxu1 %v3996_v51  ;;  %v4081_v51 = vld [vmem:[%s5894_s1 + $0x3e8] ss:$16 sps:$4 sm:$0xff]   ;;  %v4086_v53 = vld [vmem:[%s5894_s1 + $0x40c] ss:$16 sps:$4 sm:$0xff]  }
  0x6b   :  { %1341 = vmatpush2.bf16.msra.mxu0 %v3997_v55  ;;  %v4084_v55 = vld [vmem:[%s5894_s1 + $0x408] ss:$16 sps:$4 sm:$0xff]  }
  0x6c   :  { %1419 = vmatpush2.bf16.msra.mxu1 %v3994_v54  ;;  %1342 = vmatprep.subr.bf16.mxu0 %v4005_v57  ;;  %v4089_v54 = vld [vmem:[%s5894_s1 + $0x3cc] ss:$16 sps:$4 sm:$0xff]  }
  0x6d   :  { %1420 = vmatprep.subr.bf16.mxu1 %v4002_v56  ;;  %v4087_v56 = vld [vmem:[%s5894_s1 + $0x3c8] ss:$16 sps:$4 sm:$0xff]   ;;  %v4092_v57 = vld [vmem:[%s5894_s1 + $0x5ec] ss:$16 sps:$4 sm:$0xff]  }
  0x6f   :  { %1343 = vmatpush2.bf16.msra.mxu0 %v4003_v59  ;;  %v4090_v59 = vld [vmem:[%s5894_s1 + $0x5e8] ss:$16 sps:$4 sm:$0xff]  }
  0x70   :  { %1421 = vmatpush2.bf16.msra.mxu1 %v4000_v58  ;;  %1344 = vmatprep.subr.bf16.mxu0 %v4011_v61  ;;  %v4095_v58 = vld [vmem:[%s5894_s1 + $0x3ac] ss:$16 sps:$4 sm:$0xff]  }
  0x71   :  { %1422 = vmatprep.subr.bf16.mxu1 %v4008_v60  ;;  %v4093_v60 = vld [vmem:[%s5894_s1 + $0x3a8] ss:$16 sps:$4 sm:$0xff]   ;;  %v4098_v61 = vld [vmem:[%s5894_s1 + $0x5cc] ss:$16 sps:$4 sm:$0xff]  }
  0x73   :  { %1345 = vmatpush2.bf16.msra.mxu0 %v4009_v63  ;;  %v4096_v63 = vld [vmem:[%s5894_s1 + $0x5c8] ss:$16 sps:$4 sm:$0xff]  }
  0x74   :  { %1423 = vmatpush2.bf16.msra.mxu1 %v4006_v62  ;;  %1346 = vmatprep.subr.bf16.mxu0 %v4017_v1  ;;  %v4101_v62 = vld [vmem:[%s5894_s1 + $0x38c] ss:$16 sps:$4 sm:$0xff]  }
  0x75   :  { %1424 = vmatprep.subr.bf16.mxu1 %v4014_v0  ;;  %v4099_v0 = vld [vmem:[%s5894_s1 + $0x388] ss:$16 sps:$4 sm:$0xff]   ;;  %v4104_v1 = vld [vmem:[%s5894_s1 + $0x5ac] ss:$16 sps:$4 sm:$0xff]  }
  0x77   :  { %1347 = vmatpush2.bf16.msra.mxu0 %v4015_v3  ;;  %v4102_v3 = vld [vmem:[%s5894_s1 + $0x5a8] ss:$16 sps:$4 sm:$0xff]  }
  0x78   :  { %1425 = vmatpush2.bf16.msra.mxu1 %v4012_v2  ;;  %1348 = vmatprep.subr.bf16.mxu0 %v4023_v5  ;;  %v4107_v2 = vld [vmem:[%s5894_s1 + $0x36c] ss:$16 sps:$4 sm:$0xff]  }
  0x79   :  { %1426 = vmatprep.subr.bf16.mxu1 %v4020_v4  ;;  %v4105_v4 = vld [vmem:[%s5894_s1 + $0x368] ss:$16 sps:$4 sm:$0xff]   ;;  %v4110_v5 = vld [vmem:[%s5894_s1 + $0x58c] ss:$16 sps:$4 sm:$0xff]  }
  0x7b   :  { %1349 = vmatpush2.bf16.msra.mxu0 %v4021_v7  ;;  %v4108_v7 = vld [vmem:[%s5894_s1 + $0x588] ss:$16 sps:$4 sm:$0xff]  }
  0x7c   :  { %1427 = vmatpush2.bf16.msra.mxu1 %v4018_v6  ;;  %1350 = vmatprep.subr.bf16.mxu0 %v4029_v11  ;;  %v4113_v6 = vld [vmem:[%s5894_s1 + $0x34c] ss:$16 sps:$4 sm:$0xff]  }
  0x7d   :  { %1428 = vmatprep.subr.bf16.mxu1 %v4026_v10  ;;  %v4111_v10 = vld [vmem:[%s5894_s1 + $0x348] ss:$16 sps:$4 sm:$0xff]   ;;  %v4116_v11 = vld [vmem:[%s5894_s1 + $0x56c] ss:$16 sps:$4 sm:$0xff]  }
  0x7f   :  { %1351 = vmatpush2.bf16.msra.mxu0 %v4027_v13  ;;  %v4114_v13 = vld [vmem:[%s5894_s1 + $0x568] ss:$16 sps:$4 sm:$0xff]  }
  0x80   :  { %1429 = vmatpush2.bf16.msra.mxu1 %v4024_v12  ;;  %1443 = vmatprep.subr.bf16.mxu0 %v4035_v17  ;;  %v4119_v12 = vld [vmem:[%s5894_s1 + $0x32c] ss:$16 sps:$4 sm:$0xff]  }
  0x81   :  { %1430 = vmatprep.subr.bf16.mxu1 %v4032_v14  ;;  %v4117_v14 = vld [vmem:[%s5894_s1 + $0x328] ss:$16 sps:$4 sm:$0xff]   ;;  %v4125_v17 = vld [vmem:[%s5894_s1 + $0x30c] ss:$16 sps:$4 sm:$0xff]  }
  0x82   :  { %1353 = vmatmul.mubr.bf16.vlgmr.msra.gmra.mxu0 %v4938_v20 }
  0x83   :  { %1444 = vmatpush1.bf16.msra.mxu0 %v4033_v21  ;;  %1475 = vmatprep.mubr.bf16.mxu0 %v4664_v52  ;;  %v4051_v52 = vld [vmem:[%s5894_s1 + $0x288] ss:$16 sps:$4 sm:$0xff]  }
  0x84   :  { %1431 = vmatpush2.bf16.msra.mxu1 %v4030_v18  ;;  %1445 = vmatprep.subr.bf16.mxu0 %v4041_v23  ;;  %v4120_v18 = vld [vmem:[%s5894_s1 + $0x548] ss:$16 sps:$4 sm:$0xff]   ;;  %v4131_v23 = vld [vmem:[%s5894_s1 + $0x60c] ss:$16 sps:$4 sm:$0xff]  }
  0x85   :  { %1432 = vmatprep.subr.bf16.mxu1 %v4038_v22  ;;  %v4123_v21 = vld [vmem:[%s5894_s1 + $0x308] ss:$16 sps:$4 sm:$0xff]   ;;  %v4128_v22 = vld [vmem:[%s5894_s1 + $0x52c] ss:$16 sps:$4 sm:$0xff]  }
  0x87   :  { %1446 = vmatpush1.bf16.msra.mxu0 %v4039_v25  ;;  %v4129_v25 = vld [vmem:[%s5894_s1 + $0x608] ss:$16 sps:$4 sm:$0xff]  }
  0x88   :  { %1433 = vmatpush2.bf16.msra.mxu1 %v4036_v24  ;;  %1447 = vmatprep.subr.bf16.mxu0 %v4047_v27  ;;  %v4126_v24 = vld [vmem:[%s5894_s1 + $0x528] ss:$16 sps:$4 sm:$0xff]  }
  0x89   :  { %1484 = vmatprep.subr.bf16.mxu1 %v4044_v26  ;;  %v4134_v26 = vld [vmem:[%s5894_s1 + $0x50c] ss:$16 sps:$4 sm:$0xff]  }
  0x8a   :  { %v4137_v27 = vld [vmem:[%s5896_s3 + $0x18c] ss:$28 sps:$4 sm:$0xff]  }
  0x8b   :  { %1435 = vmatmul.mubr.bf16.vlgmr.msra.gmra.mxu1 %v4725_v8  ;;  %1448 = vmatpush1.bf16.msra.mxu0 %v4045_v29  ;;  %v4057_v8 = vld [vmem:[%s5894_s1 + $0x268] ss:$16 sps:$4 sm:$0xff]  }
  0x8c   :  { %1485 = vmatpush1.bf16.msra.mxu1 %v4042_v28  ;;  %1449 = vmatprep.subr.bf16.mxu0 %v4053_v31  ;;  %v4132_v28 = vld [vmem:[%s5894_s1 + $0x508] ss:$16 sps:$4 sm:$0xff]   ;;  %v4138_v31 = vld [vmem:[%s5896_s3 + $0x150] ss:$28 sps:$4 sm:$0xff]  }
  0x8d   :  { %1486 = vmatprep.subr.bf16.mxu1 %v4050_v30  ;;  %1516 = vmatprep.mubr.bf16.mxu1 %v4809_v36  ;;  %v4063_v36 = vld [vmem:[%s5894_s1 + $0x248] ss:$16 sps:$4 sm:$0xff]   ;;  %v4140_v30 = vld [vmem:[%s5896_s3 + $0x154] ss:$28 sps:$4 sm:$0xff]  }
  0x8e   :  { %v4135_v29 = vld [vmem:[%s5896_s3 + $0x188] ss:$28 sps:$4 sm:$0xff]  }
  0x8f   :  { %1450 = vmatpush1.bf16.msra.mxu0 %v4051_v52  ;;  %v4191_v52 = vld [vmem:[%s5896_s3 + $0x50c] ss:$28 sps:$4 sm:$0xff]  }
  0x90   :  { %1487 = vmatpush1.bf16.msra.mxu1 %v4048_v32  ;;  %1451 = vmatprep.subr.bf16.mxu0 %v4059_v34  ;;  %v4146_v32 = vld [vmem:[%s5896_s3 + $0xe4] ss:$28 sps:$4 sm:$0xff]  }
  0x91   :  { %1488 = vmatprep.subr.bf16.mxu1 %v4056_v33  ;;  %v4149_v33 = vld [vmem:[%s5896_s3 + $0xac] ss:$28 sps:$4 sm:$0xff]  }
  0x92   :  { %v4147_v34 = vld [vmem:[%s5896_s3 + $0xa8] ss:$28 sps:$4 sm:$0xff]  }
  0x93   :  { %1452 = vmatpush1.bf16.msra.mxu0 %v4057_v8  ;;  %v4197_v8 = vld [vmem:[%s5896_s3 + $0x4d4] ss:$28 sps:$4 sm:$0xff]  }
  0x94   :  { %1489 = vmatpush1.bf16.msra.mxu1 %v4054_v35  ;;  %1453 = vmatprep.subr.bf16.mxu0 %v4065_v38  ;;  %v4195_v35 = vld [vmem:[%s5896_s3 + $0x4d0] ss:$28 sps:$4 sm:$0xff]  }
  0x95   :  { %1490 = vmatprep.subr.bf16.mxu1 %v4062_v37  ;;  %v4152_v37 = vld [vmem:[%s5896_s3 + $0x74] ss:$28 sps:$4 sm:$0xff]  }
  0x96   :  { %v4150_v38 = vld [vmem:[%s5896_s3 + $0x70] ss:$28 sps:$4 sm:$0xff]  }
  0x97   :  { %1454 = vmatpush1.bf16.msra.mxu0 %v4063_v36  ;;  %v4203_v36 = vld [vmem:[%s5896_s3 + $0x49c] ss:$28 sps:$4 sm:$0xff]  }
  0x98   :  { %1491 = vmatpush1.bf16.msra.mxu1 %v4060_v39  ;;  %1455 = vmatprep.subr.bf16.mxu0 %v4071_v41  ;;  %v4201_v39 = vld [vmem:[%s5896_s3 + $0x498] ss:$28 sps:$4 sm:$0xff]  }
  0x99   :  { %1492 = vmatprep.subr.bf16.mxu1 %v4068_v40  ;;  %v4155_v40 = vld [vmem:[%s5896_s3 + $0x3c] ss:$28 sps:$4 sm:$0xff]  }
  0x9a   :  { %v4153_v41 = vld [vmem:[%s5896_s3 + $0x38] ss:$28 sps:$4 sm:$0xff]  }
  0x9b   :  { %1456 = vmatpush1.bf16.msra.mxu0 %v4069_v43  ;;  %v4209_v43 = vld [vmem:[%s5896_s3 + $0x464] ss:$28 sps:$4 sm:$0xff]  }
  0x9c   :  { %1493 = vmatpush1.bf16.msra.mxu1 %v4066_v42  ;;  %1457 = vmatprep.subr.bf16.mxu0 %v4077_v45  ;;  %v4207_v42 = vld [vmem:[%s5896_s3 + $0x460] ss:$28 sps:$4 sm:$0xff]  }
  0x9d   :  { %1494 = vmatprep.subr.bf16.mxu1 %v4074_v44  ;;  %v4158_v44 = vld [vmem:[%s5896_s3 + $0x4] ss:$28 sps:$4 sm:$0xff]  }
  0x9e   :  { %v4156_v45 = vld [vmem:[%s5896_s3] ss:$28 sps:$4 sm:$0xff]  }
  0x9f   :  { %1458 = vmatpush1.bf16.msra.mxu0 %v4075_v47  ;;  %v4215_v47 = vld [vmem:[%s5896_s3 + $0x42c] ss:$28 sps:$4 sm:$0xff]  }
  0xa0   :  { %1495 = vmatpush1.bf16.msra.mxu1 %v4072_v46  ;;  %1459 = vmatprep.subr.bf16.mxu0 %v4083_v49  ;;  %v4213_v46 = vld [vmem:[%s5896_s3 + $0x428] ss:$28 sps:$4 sm:$0xff]  }
  0xa1   :  { %1496 = vmatprep.subr.bf16.mxu1 %v4080_v48  ;;  %v4161_v48 = vld [vmem:[%s5896_s3 + $0x34c] ss:$28 sps:$4 sm:$0xff]  }
  0xa2   :  { %v4159_v49 = vld [vmem:[%s5896_s3 + $0x348] ss:$28 sps:$4 sm:$0xff]  }
  0xa3   :  { %1460 = vmatpush2.bf16.msra.mxu0 %v4081_v51  ;;  %v4221_v51 = vld [vmem:[%s5896_s3 + $0x3f4] ss:$28 sps:$4 sm:$0xff]  }
  0xa4   :  { %1497 = vmatpush1.bf16.msra.mxu1 %v4078_v50  ;;  %1461 = vmatprep.subr.bf16.mxu0 %v4089_v54  ;;  %v4219_v50 = vld [vmem:[%s5896_s3 + $0x3f0] ss:$28 sps:$4 sm:$0xff]  }
  0xa5   :  { %1498 = vmatprep.subr.bf16.mxu1 %v4086_v53  ;;  %v4164_v53 = vld [vmem:[%s5896_s3 + $0x314] ss:$28 sps:$4 sm:$0xff]  }
  0xa6   :  { %v4162_v54 = vld [vmem:[%s5896_s3 + $0x310] ss:$28 sps:$4 sm:$0xff]  }
  0xa7   :  { %1462 = vmatpush2.bf16.msra.mxu0 %v4087_v56  ;;  %v4227_v56 = vld [vmem:[%s5896_s3 + $0x3bc] ss:$28 sps:$4 sm:$0xff]  }
  0xa8   :  { %1499 = vmatpush1.bf16.msra.mxu1 %v4084_v55  ;;  %1463 = vmatprep.subr.bf16.mxu0 %v4095_v58  ;;  %v4225_v55 = vld [vmem:[%s5896_s3 + $0x3b8] ss:$28 sps:$4 sm:$0xff]  }
  0xa9   :  { %1500 = vmatprep.subr.bf16.mxu1 %v4092_v57  ;;  %v4167_v57 = vld [vmem:[%s5896_s3 + $0x2dc] ss:$28 sps:$4 sm:$0xff]  }
  0xaa   :  { %v4165_v58 = vld [vmem:[%s5896_s3 + $0x2d8] ss:$28 sps:$4 sm:$0xff]  }
  0xab   :  { %1464 = vmatpush2.bf16.msra.mxu0 %v4093_v60  ;;  %v4233_v60 = vld [vmem:[%s5896_s3 + $0x384] ss:$28 sps:$4 sm:$0xff]  }
  0xac   :  { %1501 = vmatpush2.bf16.msra.mxu1 %v4090_v59  ;;  %1465 = vmatprep.subr.bf16.mxu0 %v4101_v62  ;;  %v4231_v59 = vld [vmem:[%s5896_s3 + $0x380] ss:$28 sps:$4 sm:$0xff]  }
  0xad   :  { %1502 = vmatprep.subr.bf16.mxu1 %v4098_v61  ;;  %v4170_v61 = vld [vmem:[%s5896_s3 + $0x2a4] ss:$28 sps:$4 sm:$0xff]  }
  0xaf   :  { %1466 = vmatpush2.bf16.msra.mxu0 %v4099_v0 }
  0xb0   :  { %1503 = vmatpush2.bf16.msra.mxu1 %v4096_v63  ;;  %1467 = vmatprep.subr.bf16.mxu0 %v4107_v2 }
  0xb1   :  { %1504 = vmatprep.subr.bf16.mxu1 %v4104_v1 }
  0xb3   :  { %1468 = vmatpush2.bf16.msra.mxu0 %v4105_v4 }
  0xb4   :  { %1505 = vmatpush2.bf16.msra.mxu1 %v4102_v3  ;;  %1469 = vmatprep.subr.bf16.mxu0 %v4113_v6 }
  0xb5   :  { %1506 = vmatprep.subr.bf16.mxu1 %v4110_v5 }
  0xb7   :  { %1470 = vmatpush2.bf16.msra.mxu0 %v4111_v10 }
  0xb8   :  { %1507 = vmatpush2.bf16.msra.mxu1 %v4108_v7  ;;  %1471 = vmatprep.subr.bf16.mxu0 %v4119_v12 }
  0xb9   :  { %1508 = vmatprep.subr.bf16.mxu1 %v4116_v11 }
  0xbb   :  { %1472 = vmatpush2.bf16.msra.mxu0 %v4117_v14 }
  0xbc   :  { %1509 = vmatpush2.bf16.msra.mxu1 %v4114_v13  ;;  %1473 = vmatprep.subr.bf16.mxu0 %v4125_v17 }
  0xbd   :  { %1510 = vmatprep.subr.bf16.mxu1 %v4122_v15 }
  0xbf   :  { %1474 = vmatpush2.bf16.msra.mxu0 %v4123_v21 }
  0xc0   :  { %1511 = vmatpush2.bf16.msra.mxu1 %v4120_v18  ;;  %1539 = vmatprep.subr.bf16.mxu0 %v4131_v23 }
  0xc1   :  { %1512 = vmatprep.subr.bf16.mxu1 %v4128_v22 }
  0xc2   :  { %1476 = vmatmul.mubr.bf16.vlgmr.msra.gmra.mxu0 %v4727_v9  ;;  %v4143_v9 = vld [vmem:[%s5896_s3 + $0x11c] ss:$28 sps:$4 sm:$0xff]  }
  0xc3   :  { %1540 = vmatpush1.bf16.msra.mxu0 %v4129_v25  ;;  %1557 = vmatprep.mubr.bf16.mxu0 %v4477_v16  ;;  %v4141_v16 = vld [vmem:[%s5896_s3 + $0x118] ss:$28 sps:$4 sm:$0xff]  }
  0xc4   :  { %1513 = vmatpush2.bf16.msra.mxu1 %v4126_v24  ;;  %3019 = vmatprep.subr.bf16.mxu0 %v4137_v27 }
  0xc5   :  { %1514 = vmatprep.subr.bf16.mxu1 %v4134_v26 }
  0xc8   :  { %1515 = vmatpush2.bf16.msra.mxu1 %v4132_v28 }
  0xc9   :  { %3060 = vmatprep.subr.bf16.mxu1 %v4191_v52 }
  0xca   :  { %3570 = vmatmul.mubr.msk.bf16.vlgmr.msra.gmra.mxu0 %vm1234_vm0, %v4756_v19  ;;  %v4144_v19 = vld [vmem:[%s5896_s3 + $0xe0] ss:$28 sps:$4 sm:$0xff]  }
  0xcb   :  { %1517 = vmatmul.mubr.bf16.vlgmr.msra.gmra.mxu1 %v4938_v20  ;;  %3020 = vmatpush1.bf16.msra.mxu0 %v4135_v29  ;;  %v4189_v20 = vld [vmem:[%s5896_s3 + $0x508] ss:$28 sps:$4 sm:$0xff]  }
  0xcc   :  { %3021 = vmatprep.subr.bf16.mxu0 %v4140_v30  ;;  %3061 = vmatpush1.bf16.msra.mxu1 %v4189_v20 }
  0xcd   :  { %3062 = vmatprep.subr.bf16.mxu1 %v4197_v8 }
  0xcf   :  { %3022 = vmatpush1.bf16.msra.mxu0 %v4138_v31 }
  0xd0   :  { %3023 = vmatprep.subr.bf16.mxu0 %v4143_v9  ;;  %3063 = vmatpush1.bf16.msra.mxu1 %v4195_v35 }
  0xd1   :  { %3064 = vmatprep.subr.bf16.mxu1 %v4203_v36 }
  0xd3   :  { %3024 = vmatpush1.bf16.msra.mxu0 %v4141_v16 }
  0xd4   :  { %3025 = vmatprep.subr.bf16.mxu0 %v4146_v32  ;;  %3065 = vmatpush1.bf16.msra.mxu1 %v4201_v39 }
  0xd5   :  { %3066 = vmatprep.subr.bf16.mxu1 %v4209_v43 }
  0xd7   :  { %3026 = vmatpush1.bf16.msra.mxu0 %v4144_v19 }
  0xd8   :  { %3027 = vmatprep.subr.bf16.mxu0 %v4149_v33  ;;  %3067 = vmatpush1.bf16.msra.mxu1 %v4207_v42 }
  0xd9   :  { %3068 = vmatprep.subr.bf16.mxu1 %v4215_v47 }
  0xdb   :  { %3028 = vmatpush1.bf16.msra.mxu0 %v4147_v34 }
  0xdc   :  { %3029 = vmatprep.subr.bf16.mxu0 %v4152_v37  ;;  %3069 = vmatpush1.bf16.msra.mxu1 %v4213_v46 }
  0xdd   :  { %3070 = vmatprep.subr.bf16.mxu1 %v4221_v51 }
  0xdf   :  { %3030 = vmatpush1.bf16.msra.mxu0 %v4150_v38 }
  0xe0   :  { %3031 = vmatprep.subr.bf16.mxu0 %v4155_v40  ;;  %3071 = vmatpush1.bf16.msra.mxu1 %v4219_v50 }
  0xe1   :  { %3072 = vmatprep.subr.bf16.mxu1 %v4227_v56 }
  0xe3   :  { %3032 = vmatpush1.bf16.msra.mxu0 %v4153_v41 }
  0xe4   :  { %3033 = vmatprep.subr.bf16.mxu0 %v4158_v44  ;;  %3073 = vmatpush1.bf16.msra.mxu1 %v4225_v55 }
  0xe7   :  { %3034 = vmatpush1.bf16.msra.mxu0 %v4156_v45 }
  0xe8   :  { %3035 = vmatprep.subr.bf16.mxu0 %v4161_v48 }
  0xeb   :  { %3036 = vmatpush2.bf16.msra.mxu0 %v4159_v49 }
  0xec   :  { %3037 = vmatprep.subr.bf16.mxu0 %v4164_v53 }
  0xef   :  { %3038 = vmatpush2.bf16.msra.mxu0 %v4162_v54 }
  0xf0   :  { %3039 = vmatprep.subr.bf16.mxu0 %v4167_v57 }
  0xf1   :  { %10 = vsyncpa [#allocation3], 0  ;;  %3074 = vmatprep.subr.bf16.mxu1 %v4233_v60  ;;  %v4168_v62 = vld [vmem:[%s5896_s3 + $0x2a0] ss:$28 sps:$4 sm:$0xff]   ;;  %v4237_v63 = vld [vmem:[%s5896_s3 + $0x6c8] ss:$28 sps:$4 sm:$0xff]   ;;  %v234_v37 = vlaneseq }
  0xf2   :  { %3075 = vmatpush1.bf16.msra.mxu1 %v4231_v59  ;;  %v4239_v0 = vld [vmem:[%s5896_s3 + $0x6cc] ss:$28 sps:$4 sm:$0xff]   ;;  %v4245_v4 = vld [vmem:[%s5896_s3 + $0x694] ss:$28 sps:$4 sm:$0xff]   ;;  %v4251_v10 = vld [vmem:[%s5896_s3 + $0x65c] ss:$28 sps:$4 sm:$0xff]  }
  0xf3   :  { %3040 = vmatpush2.bf16.msra.mxu0 %v4165_v58  ;;  %v4173_v1 = vld [vmem:[%s5896_s3 + $0x26c] ss:$28 sps:$4 sm:$0xff]   ;;  %3076 = vmatprep.subr.bf16.mxu1 %v4239_v0  ;;  %v4176_v5 = vld [vmem:[%s5896_s3 + $0x234] ss:$28 sps:$4 sm:$0xff]   ;;  %v4179_v11 = vld [vmem:[%s5896_s3 + $0x1fc] ss:$28 sps:$4 sm:$0xff]  }
  0xf4   :  { %3041 = vmatprep.subr.bf16.mxu0 %v4170_v61  ;;  %v4171_v2 = vld [vmem:[%s5896_s3 + $0x268] ss:$28 sps:$4 sm:$0xff]   ;;  %v4243_v3 = vld [vmem:[%s5896_s3 + $0x690] ss:$28 sps:$4 sm:$0xff]   ;;  %v4249_v7 = vld [vmem:[%s5896_s3 + $0x658] ss:$28 sps:$4 sm:$0xff]  }
  0xf5   :  { %v4174_v6 = vld [vmem:[%s5896_s3 + $0x230] ss:$28 sps:$4 sm:$0xff]   ;;  %v4177_v12 = vld [vmem:[%s5896_s3 + $0x1f8] ss:$28 sps:$4 sm:$0xff]   ;;  %v4255_v13 = vld [vmem:[%s5896_s3 + $0x620] ss:$28 sps:$4 sm:$0xff]  }
  0xf6   :  { %3077 = vmatpush2.bf16.msra.mxu1 %v4237_v63  ;;  %v4257_v14 = vld [vmem:[%s5896_s3 + $0x624] ss:$28 sps:$4 sm:$0xff]   ;;  %v4263_v22 = vld [vmem:[%s5896_s3 + $0x5ec] ss:$28 sps:$4 sm:$0xff]   ;;  %v4185_v25 = vld [vmem:[%s5896_s3 + $0x194] ss:$28 sps:$4 sm:$0xff]  }
  0xf7   :  { %3042 = vmatpush2.bf16.msra.mxu0 %v4168_v62  ;;  %3078 = vmatprep.subr.bf16.mxu1 %v4245_v4  ;;  %v4182_v15 = vld [vmem:[%s5896_s3 + $0x1c4] ss:$28 sps:$4 sm:$0xff]   ;;  %v4269_v29 = vld [vmem:[%s5896_s3 + $0x5b4] ss:$28 sps:$4 sm:$0xff]   ;;  %v4275_v32 = vld [vmem:[%s5896_s3 + $0x57c] ss:$28 sps:$4 sm:$0xff]  }
  0xf8   :  { %3043 = vmatprep.subr.bf16.mxu0 %v4173_v1  ;;  %v4180_v21 = vld [vmem:[%s5896_s3 + $0x1c0] ss:$28 sps:$4 sm:$0xff]   ;;  %v4261_v26 = vld [vmem:[%s5896_s3 + $0x5e8] ss:$28 sps:$4 sm:$0xff]   ;;  %v4267_v9 = vld [vmem:[%s5896_s3 + $0x5b0] ss:$28 sps:$4 sm:$0xff]  }
  0xf9   :  { %v4273_v20 = vld [vmem:[%s5896_s3 + $0x578] ss:$28 sps:$4 sm:$0xff]   ;;  %v4281_v33 = vld [vmem:[%s5896_s3 + $0x544] ss:$28 sps:$4 sm:$0xff]   ;;  %v5348_v38 = vshrl.u32 %v234_v37, 7 }
  0xfa   :  { %3079 = vmatpush2.bf16.msra.mxu1 %v4243_v3  ;;  %v4279_v35 = vld [vmem:[%s5896_s3 + $0x540] ss:$28 sps:$4 sm:$0xff]   ;;  %v4287_v8 = vld [vmem:[%s5896_s3 + $0x514] ss:$28 sps:$4 sm:$0xff]  }
  0xfb   :  { %3044 = vmatpush2.bf16.msra.mxu0 %v4171_v2  ;;  %3080 = vmatprep.subr.bf16.mxu1 %v4251_v10  ;;  %v236_v39 = vsub.s32 0, %v5348_v38  ;;  %v5354_v36 = vld [vmem:[%s5895_s2] sm:$0xf]  ;;  %v240_v40 = vsub.s32 1, %v5348_v38  ;;  %v4183_v60 = vld [vmem:[%s5896_s3 + $0x190] ss:$28 sps:$4 sm:$0xff]  }
  0xfc   :  { %3045 = vmatprep.subr.bf16.mxu0 %v4176_v5  ;;  %v4188_v63 = vld [vmem:[%s5896_s3 + $0x15c] ss:$28 sps:$4 sm:$0xff]   ;;  %v4194_v3 = vld [vmem:[%s5896_s3 + $0x124] ss:$28 sps:$4 sm:$0xff]   ;;  %v4200_v5 = vld [vmem:[%s5896_s3 + $0xec] ss:$28 sps:$4 sm:$0xff]  }
  0xfd   :  { %v237_v41 = vrot.slane %v5354_v36, %v236_v39  ;;  %v241_v42 = vrot.slane %v5354_v36, %v240_v40  ;;  %v4186_v1 = vld [vmem:[%s5896_s3 + $0x158] ss:$28 sps:$4 sm:$0xff]   ;;  %v4192_v4 = vld [vmem:[%s5896_s3 + $0x120] ss:$28 sps:$4 sm:$0xff]   ;;  %v4204_v10 = vld [vmem:[%s5896_s3 + $0xb0] ss:$28 sps:$4 sm:$0xff]  }
  0xfe   :  { %3081 = vmatpush2.bf16.msra.mxu1 %v4249_v7  ;;  %v4206_v7 = vld [vmem:[%s5896_s3 + $0xb4] ss:$28 sps:$4 sm:$0xff]  }
  0xff   :  { %3046 = vmatpush2.bf16.msra.mxu0 %v4174_v6  ;;  %3082 = vmatprep.subr.bf16.mxu1 %v4257_v14  ;;  %v4198_v6 = vld [vmem:[%s5896_s3 + $0xe8] ss:$28 sps:$4 sm:$0xff]   ;;  %v4216_v14 = vld [vmem:[%s5896_s3 + $0x40] ss:$28 sps:$4 sm:$0xff]  }
 0x100   :  { %3047 = vmatprep.subr.bf16.mxu0 %v4179_v11  ;;  %v4212_v11 = vld [vmem:[%s5896_s3 + $0x7c] ss:$28 sps:$4 sm:$0xff]  }
 0x102   :  { %v1272_v17 = vpop.f32.mrf.mxu0  ;;  %3083 = vmatpush2.bf16.msra.mxu1 %v4255_v13  ;;  %v4218_v13 = vld [vmem:[%s5896_s3 + $0x44] ss:$28 sps:$4 sm:$0xff]  }
 0x103   :  { %v1313_v18 = vpop.f32.mrf.mxu1  ;;  %3048 = vmatpush2.bf16.msra.mxu0 %v4177_v12  ;;  %3084 = vmatprep.subr.bf16.mxu1 %v4263_v22  ;;  %v1273_v43 = vadd.f32 %v1272_v17, %v237_v41  ;;  %v4210_v12 = vld [vmem:[%s5896_s3 + $0x78] ss:$28 sps:$4 sm:$0xff]   ;;  %v4222_v17 = vld [vmem:[%s5896_s3 + $0x8] ss:$28 sps:$4 sm:$0xff]  }
 0x104   :  { %v1274_v23 = vpop.f32.mrf.mxu0  ;;  %3049 = vmatprep.subr.bf16.mxu0 %v4182_v15  ;;  %v4224_v15 = vld [vmem:[%s5896_s3 + $0xc] ss:$28 sps:$4 sm:$0xff]   ;;  %v4236_v22 = vld [vmem:[%s5896_s3 + $0x31c] ss:$28 sps:$4 sm:$0xff]  }
 0x105   :  { %v1315_v24 = vpop.f32.mrf.mxu1  ;;  %v1275_v44 = vadd.f32 %v1274_v23, %v241_v42  ;;  %v1314_v45 = vadd.f32 %v1313_v18, %v1273_v43  ;;  %v4230_v18 = vld [vmem:[%s5896_s3 + $0x354] ss:$28 sps:$4 sm:$0xff]   ;;  %v4270_v41 = vld [vmem:[%s5896_s3 + $0x1c8] ss:$28 sps:$4 sm:$0xff]   ;;  %v4278_v43 = vld [vmem:[%s5896_s3 + $0x19c] ss:$28 sps:$4 sm:$0xff]  }
 0x106   :  { %v1276_v27 = vpop.f32.mrf.mxu0  ;;  %3085 = vmatpush2.bf16.msra.mxu1 %v4261_v26  ;;  %v4234_v23 = vld [vmem:[%s5896_s3 + $0x318] ss:$28 sps:$4 sm:$0xff]   ;;  %v4248_v26 = vld [vmem:[%s5896_s3 + $0x2ac] ss:$28 sps:$4 sm:$0xff]  }
 0x107   :  { %v1317_v28 = vpop.f32.mrf.mxu1  ;;  %3050 = vmatpush2.bf16.msra.mxu0 %v4180_v21  ;;  %3086 = vmatprep.subr.bf16.mxu1 %v4269_v29  ;;  %v1316_v47 = vadd.f32 %v1315_v24, %v1275_v44  ;;  %v4228_v21 = vld [vmem:[%s5896_s3 + $0x350] ss:$28 sps:$4 sm:$0xff]   ;;  %v4242_v24 = vld [vmem:[%s5896_s3 + $0x2e4] ss:$28 sps:$4 sm:$0xff]  }
 0x108   :  { %v1277_v30 = vpop.f32.mrf.mxu0  ;;  %3101 = vmatprep.subr.bf16.mxu0 %v4185_v25  ;;  %v4240_v25 = vld [vmem:[%s5896_s3 + $0x2e0] ss:$28 sps:$4 sm:$0xff]   ;;  %v4246_v27 = vld [vmem:[%s5896_s3 + $0x2a8] ss:$28 sps:$4 sm:$0xff]   ;;  %v4254_v28 = vld [vmem:[%s5896_s3 + $0x274] ss:$28 sps:$4 sm:$0xff]  }
 0x109   :  { %v1318_v31 = vpop.f32.mrf.mxu1  ;;  %v4252_v29 = vld [vmem:[%s5896_s3 + $0x270] ss:$28 sps:$4 sm:$0xff]   ;;  %v4260_v30 = vld [vmem:[%s5896_s3 + $0x23c] ss:$28 sps:$4 sm:$0xff]  }
 0x10a   :  { %3087 = vmatpush2.bf16.msra.mxu1 %v4267_v9  ;;  %v244_v31 = vsub.s32 2, %v5348_v38  ;;  %v4258_v9 = vld [vmem:[%s5896_s3 + $0x238] ss:$28 sps:$4 sm:$0xff]  }
 0x10b   :  { %v1395_v16 = vpop.f32.mrf.mxu1  ;;  %3088 = vmatprep.subr.bf16.mxu1 %v4275_v32  ;;  %v248_v32 = vsub.s32 3, %v5348_v38 }
 0x10d   :  { %v1397_v19 = vpop.f32.mrf.mxu1 }
 0x10e   :  { %3089 = vmatpush2.bf16.msra.mxu1 %v4273_v20  ;;  %v245_v20 = vrot.slane %v5354_v36, %v244_v31 }
 0x10f   :  { %v1399_v52 = vpop.f32.mrf.mxu1  ;;  %3090 = vmatprep.subr.bf16.mxu1 %v4281_v33 }
 0x110   :  { %v4264_v52 = vld [vmem:[%s5896_s3 + $0x200] ss:$28 sps:$4 sm:$0xff]  }
 0x111   :  { %v1400_v34 = vpop.f32.mrf.mxu1 }
 0x112   :  { %3091 = vmatpush2.bf16.msra.mxu1 %v4279_v35  ;;  %v4272_v34 = vld [vmem:[%s5896_s3 + $0x1cc] ss:$28 sps:$4 sm:$0xff]   ;;  %v249_v35 = vrot.slane %v5354_v36, %v248_v32 }
 0x113   :  { %3142 = vmatprep.subr.bf16.mxu1 %v4287_v8 }
 0x142   :  { %v1354_v46 = vpop.f32.mrf.mxu0 }
 0x143   :  { %v1355_v48 = vadd.f32 %v1354_v46, %v1314_v45 }
 0x144   :  { %v1356_v49 = vpop.f32.mrf.mxu0 }
 0x145   :  { %v1396_v50 = vadd.f32 %v1395_v16, %v1355_v48  ;;  %v1357_v51 = vadd.f32 %v1356_v49, %v1316_v47  ;;  %v4266_v16 = vld [vmem:[%s5896_s3 + $0x204] ss:$28 sps:$4 sm:$0xff]   ;;  %v4276_v49 = vld [vmem:[%s5896_s3 + $0x198] ss:$28 sps:$4 sm:$0xff]  }
 0x146   :  { %v1358_v53 = vpop.f32.mrf.mxu0 }
 0x147   :  { %v1398_v54 = vadd.f32 %v1397_v19, %v1357_v51  ;;  %v1566_v55 = vmax.f32 %v1396_v50, 0.0  ;;  %v4284_v53 = vld [vmem:[%s5896_s3 + $0x164] ss:$28 sps:$4 sm:$0xff]  }
 0x148   :  { %v1359_v56 = vpop.f32.mrf.mxu0 }
 0x149   :  { %v1567_v57 = vmax.f32 %v1398_v54, 0.0  ;;  %v5370_v61 = vpack.c.bf16 %v1566_v55, %v1566_v55 }
 0x14b   :  { %v5363_v58 = vpop.f32.mrf.mxu1  ;;  %v5365_v59 = vpack.c.bf16 %v1567_v57, %v1567_v57 }
 0x14c   :  { %v1437_v37 = vadd.f32 %v5363_v58, %v245_v20  ;;  %v4321_v20 = vld [vmem:[%s5896_s3 + $0x3c0] ss:$28 sps:$4 sm:$0xff]  }
 0x14d   :  { %v5372_v62 = vpop.f32.mrf.mxu1  ;;  %3051 = vmatprep.mubr.bf16.mxu0 %v5365_v59 }
 0x14e   :  { %3052 = vmatmul.mubr.bf16.vlgmr.msra.gmra.mxu0 %v5370_v61  ;;  %v1439_v44 = vadd.f32 %v5372_v62, %v249_v35  ;;  %v4327_v35 = vld [vmem:[%s5896_s3 + $0x388] ss:$28 sps:$4 sm:$0xff]  }
 0x14f   :  { %v1440_v0 = vpop.f32.mrf.mxu1  ;;  %3102 = vmatpush1.bf16.msra.mxu0 %v4183_v60  ;;  %3133 = vmatprep.mubr.bf16.mxu0 %v5365_v59  ;;  %v4282_v60 = vld [vmem:[%s5896_s3 + $0x160] ss:$28 sps:$4 sm:$0xff]  }
 0x150   :  { %3103 = vmatprep.subr.bf16.mxu0 %v4188_v63 }
 0x151   :  { %v1441_v2 = vpop.f32.mrf.mxu1 }
 0x153   :  { %3104 = vmatpush1.bf16.msra.mxu0 %v4186_v1  ;;  %v4290_v1 = vld [vmem:[%s5896_s3 + $0x12c] ss:$28 sps:$4 sm:$0xff]  }
 0x154   :  { %3105 = vmatprep.subr.bf16.mxu0 %v4194_v3 }
 0x157   :  { %3106 = vmatpush1.bf16.msra.mxu0 %v4192_v4  ;;  %v4285_v4 = vld [vmem:[%s5896_s3 + $0x510] ss:$28 sps:$4 sm:$0xff]  }
 0x158   :  { %3107 = vmatprep.subr.bf16.mxu0 %v4200_v5 }
 0x15b   :  { %3108 = vmatpush1.bf16.msra.mxu0 %v4198_v6  ;;  %v4288_v6 = vld [vmem:[%s5896_s3 + $0x128] ss:$28 sps:$4 sm:$0xff]  }
 0x15c   :  { %3109 = vmatprep.subr.bf16.mxu0 %v4206_v7  ;;  %v4293_v7 = vld [vmem:[%s5896_s3 + $0x4dc] ss:$28 sps:$4 sm:$0xff]  }
 0x15f   :  { %3110 = vmatpush1.bf16.msra.mxu0 %v4204_v10  ;;  %v4296_v10 = vld [vmem:[%s5896_s3 + $0xf4] ss:$28 sps:$4 sm:$0xff]  }
 0x160   :  { %3111 = vmatprep.subr.bf16.mxu0 %v4212_v11  ;;  %v4291_v11 = vld [vmem:[%s5896_s3 + $0x4d8] ss:$28 sps:$4 sm:$0xff]  }
 0x163   :  { %3112 = vmatpush1.bf16.msra.mxu0 %v4210_v12  ;;  %v4294_v12 = vld [vmem:[%s5896_s3 + $0xf0] ss:$28 sps:$4 sm:$0xff]  }
 0x164   :  { %3113 = vmatprep.subr.bf16.mxu0 %v4218_v13  ;;  %v4299_v13 = vld [vmem:[%s5896_s3 + $0x4a4] ss:$28 sps:$4 sm:$0xff]  }
 0x167   :  { %3114 = vmatpush1.bf16.msra.mxu0 %v4216_v14  ;;  %v4302_v14 = vld [vmem:[%s5896_s3 + $0xbc] ss:$28 sps:$4 sm:$0xff]  }
 0x168   :  { %3115 = vmatprep.subr.bf16.mxu0 %v4224_v15  ;;  %v4297_v15 = vld [vmem:[%s5896_s3 + $0x4a0] ss:$28 sps:$4 sm:$0xff]  }
 0x16b   :  { %3116 = vmatpush1.bf16.msra.mxu0 %v4222_v17  ;;  %v4300_v17 = vld [vmem:[%s5896_s3 + $0xb8] ss:$28 sps:$4 sm:$0xff]  }
 0x16c   :  { %3117 = vmatprep.subr.bf16.mxu0 %v4230_v18  ;;  %v4305_v18 = vld [vmem:[%s5896_s3 + $0x46c] ss:$28 sps:$4 sm:$0xff]  }
 0x16f   :  { %3118 = vmatpush2.bf16.msra.mxu0 %v4228_v21  ;;  %v4308_v21 = vld [vmem:[%s5896_s3 + $0x84] ss:$28 sps:$4 sm:$0xff]  }
 0x170   :  { %3119 = vmatprep.subr.bf16.mxu0 %v4236_v22  ;;  %v4303_v22 = vld [vmem:[%s5896_s3 + $0x468] ss:$28 sps:$4 sm:$0xff]  }
 0x173   :  { %3120 = vmatpush2.bf16.msra.mxu0 %v4234_v23  ;;  %v4306_v23 = vld [vmem:[%s5896_s3 + $0x80] ss:$28 sps:$4 sm:$0xff]  }
 0x174   :  { %3121 = vmatprep.subr.bf16.mxu0 %v4242_v24  ;;  %v4311_v24 = vld [vmem:[%s5896_s3 + $0x434] ss:$28 sps:$4 sm:$0xff]  }
 0x177   :  { %3122 = vmatpush2.bf16.msra.mxu0 %v4240_v25  ;;  %v4314_v25 = vld [vmem:[%s5896_s3 + $0x4c] ss:$28 sps:$4 sm:$0xff]  }
 0x178   :  { %3123 = vmatprep.subr.bf16.mxu0 %v4248_v26  ;;  %v4309_v26 = vld [vmem:[%s5896_s3 + $0x430] ss:$28 sps:$4 sm:$0xff]  }
 0x17b   :  { %3124 = vmatpush2.bf16.msra.mxu0 %v4246_v27  ;;  %v4312_v27 = vld [vmem:[%s5896_s3 + $0x48] ss:$28 sps:$4 sm:$0xff]  }
 0x17c   :  { %3125 = vmatprep.subr.bf16.mxu0 %v4254_v28  ;;  %v4317_v28 = vld [vmem:[%s5896_s3 + $0x3fc] ss:$28 sps:$4 sm:$0xff]  }
 0x17f   :  { %3126 = vmatpush2.bf16.msra.mxu0 %v4252_v29  ;;  %v4320_v29 = vld [vmem:[%s5896_s3 + $0x14] ss:$28 sps:$4 sm:$0xff]  }
 0x180   :  { %3127 = vmatprep.subr.bf16.mxu0 %v4260_v30  ;;  %v4315_v30 = vld [vmem:[%s5896_s3 + $0x3f8] ss:$28 sps:$4 sm:$0xff]  }
 0x182   :  { %v1477_v19 = vpop.f32.mrf.mxu0 }
 0x183   :  { %3128 = vmatpush2.bf16.msra.mxu0 %v4258_v9  ;;  %v1478_v45 = vadd.f32 %v1477_v19, %v1437_v37  ;;  %v4318_v9 = vld [vmem:[%s5896_s3 + $0x10] ss:$28 sps:$4 sm:$0xff]   ;;  %v4326_v19 = vld [vmem:[%s5896_s3 + $0x35c] ss:$28 sps:$4 sm:$0xff]  }
 0x184   :  { %v1479_v33 = vpop.f32.mrf.mxu0  ;;  %3129 = vmatprep.subr.bf16.mxu0 %v4266_v16  ;;  %v4323_v16 = vld [vmem:[%s5896_s3 + $0x3c4] ss:$28 sps:$4 sm:$0xff]   ;;  %v4335_v37 = vld [vmem:[%s5896_s3 + $0x6d4] ss:$28 sps:$4 sm:$0xff]  }
 0x185   :  { %v1480_v36 = vadd.f32 %v1479_v33, %v1439_v44  ;;  %v4329_v33 = vld [vmem:[%s5896_s3 + $0x38c] ss:$28 sps:$4 sm:$0xff]   ;;  %v4341_v44 = vld [vmem:[%s5896_s3 + $0x69c] ss:$28 sps:$4 sm:$0xff]  }
 0x186   :  { %v1481_v8 = vpop.f32.mrf.mxu0 }
 0x187   :  { %3130 = vmatpush2.bf16.msra.mxu0 %v4264_v52  ;;  %v4324_v52 = vld [vmem:[%s5896_s3 + $0x358] ss:$28 sps:$4 sm:$0xff]   ;;  %v4330_v8 = vld [vmem:[%s5896_s3 + $0x320] ss:$28 sps:$4 sm:$0xff]  }
 0x188   :  { %v1482_v42 = vpop.f32.mrf.mxu0  ;;  %3131 = vmatprep.subr.bf16.mxu0 %v4272_v34  ;;  %v4332_v34 = vld [vmem:[%s5896_s3 + $0x324] ss:$28 sps:$4 sm:$0xff]  }
 0x189   :  { %v4333_v42 = vld [vmem:[%s5896_s3 + $0x6d0] ss:$28 sps:$4 sm:$0xff]  }
 0x18a   :  { %v1559_v47 = vpop.f32.mrf.mxu0 }
 0x18b   :  { %v1518_v46 = vpop.f32.mrf.mxu1  ;;  %3132 = vmatpush2.bf16.msra.mxu0 %v4270_v41  ;;  %v4338_v41 = vld [vmem:[%s5896_s3 + $0x2ec] ss:$28 sps:$4 sm:$0xff]  }
 0x18c   :  { %v1519_v48 = vadd.f32 %v1518_v46, %v1478_v45  ;;  %v1561_v51 = vpop.f32.mrf.mxu0  ;;  %3183 = vmatprep.subr.bf16.mxu0 %v4278_v43  ;;  %v4336_v43 = vld [vmem:[%s5896_s3 + $0x2e8] ss:$28 sps:$4 sm:$0xff]   ;;  %v4344_v45 = vld [vmem:[%s5896_s3 + $0x2b4] ss:$28 sps:$4 sm:$0xff]  }
 0x18d   :  { %v1520_v50 = vpop.f32.mrf.mxu1  ;;  %v4339_v46 = vld [vmem:[%s5896_s3 + $0x698] ss:$28 sps:$4 sm:$0xff]  }
 0x18e   :  { %v1560_v54 = vadd.f32 %v1559_v47, %v1519_v48  ;;  %v1521_v55 = vadd.f32 %v1520_v50, %v1480_v36  ;;  %3134 = vmatmul.mubr.bf16.vlgmr.msra.gmra.mxu0 %v5370_v61  ;;  %v1563_v57 = vpop.f32.mrf.mxu0  ;;  %v4342_v47 = vld [vmem:[%s5896_s3 + $0x2b0] ss:$28 sps:$4 sm:$0xff]   ;;  %v4347_v36 = vld [vmem:[%s5896_s3 + $0x664] ss:$28 sps:$4 sm:$0xff]   ;;  %v4350_v48 = vld [vmem:[%s5896_s3 + $0x27c] ss:$28 sps:$4 sm:$0xff]  }
 0x18f   :  { %v1522_v56 = vpop.f32.mrf.mxu1  ;;  %3184 = vmatpush1.bf16.msra.mxu0 %v4276_v49  ;;  %3215 = vmatprep.mubr.bf16.mxu0 %v5365_v59  ;;  %v4345_v49 = vld [vmem:[%s5896_s3 + $0x660] ss:$28 sps:$4 sm:$0xff]   ;;  %v4348_v50 = vld [vmem:[%s5896_s3 + $0x278] ss:$28 sps:$4 sm:$0xff]   ;;  %v4362_v57 = vld [vmem:[%s5896_s3 + $0x20c] ss:$28 sps:$4 sm:$0xff]  }
 0x190   :  { %v1562_v58 = vadd.f32 %v1561_v51, %v1521_v55  ;;  %v1568_v62 = vmax.f32 %v1560_v54, 0.0  ;;  %v1564_v0 = vpop.f32.mrf.mxu0  ;;  %3185 = vmatprep.subr.bf16.mxu0 %v4284_v53  ;;  %v4353_v51 = vld [vmem:[%s5896_s3 + $0x62c] ss:$28 sps:$4 sm:$0xff]   ;;  %v4356_v53 = vld [vmem:[%s5896_s3 + $0x244] ss:$28 sps:$4 sm:$0xff]  }
 0x191   :  { %v1523_v63 = vpop.f32.mrf.mxu1  ;;  %v4351_v54 = vld [vmem:[%s5896_s3 + $0x628] ss:$28 sps:$4 sm:$0xff]   ;;  %v4354_v55 = vld [vmem:[%s5896_s3 + $0x240] ss:$28 sps:$4 sm:$0xff]   ;;  %v4359_v56 = vld [vmem:[%s5896_s3 + $0x5f4] ss:$28 sps:$4 sm:$0xff]  }
 0x192   :  { %v1569_v2 = vmax.f32 %v1562_v58, 0.0  ;;  %v5499_v5 = vpack.c.bf16 %v1568_v62, %v1568_v62  ;;  %v4357_v58 = vld [vmem:[%s5896_s3 + $0x5f0] ss:$28 sps:$4 sm:$0xff]   ;;  %v4365_v62 = vld [vmem:[%s5896_s3 + $0x5bc] ss:$28 sps:$4 sm:$0xff]  }
 0x193   :  { %3186 = vmatpush1.bf16.msra.mxu0 %v4282_v60  ;;  %v4360_v60 = vld [vmem:[%s5896_s3 + $0x208] ss:$28 sps:$4 sm:$0xff]   ;;  %v4368_v63 = vld [vmem:[%s5896_s3 + $0x1d4] ss:$28 sps:$4 sm:$0xff]  }
 0x194   :  { %v5494_v3 = vpack.c.bf16 %v1569_v2, %v1569_v2  ;;  %3187 = vmatprep.subr.bf16.mxu0 %v4290_v1  ;;  %v4363_v0 = vld [vmem:[%s5896_s3 + $0x5b8] ss:$28 sps:$4 sm:$0xff]   ;;  %v4366_v1 = vld [vmem:[%s5896_s3 + $0x1d0] ss:$28 sps:$4 sm:$0xff]   ;;  %v4371_v2 = vld [vmem:[%s5896_s3 + $0x584] ss:$28 sps:$4 sm:$0xff]  }
 0x196   :  { %3092 = vmatprep.mubr.bf16.mxu1 %v5494_v3 }
 0x197   :  { %3093 = vmatmul.mubr.bf16.vlgmr.msra.gmra.mxu1 %v5499_v5  ;;  %3188 = vmatpush1.bf16.msra.mxu0 %v4288_v6  ;;  %v4369_v6 = vld [vmem:[%s5896_s3 + $0x580] ss:$28 sps:$4 sm:$0xff]  }
 0x198   :  { %3143 = vmatpush1.bf16.msra.mxu1 %v4285_v4  ;;  %3174 = vmatprep.mubr.bf16.mxu1 %v5494_v3  ;;  %v4372_v4 = vld [vmem:[%s5896_s3 + $0x360] ss:$28 sps:$4 sm:$0xff]  }
 0x199   :  { %3144 = vmatprep.subr.bf16.mxu1 %v4293_v7  ;;  %3189 = vmatprep.subr.bf16.mxu0 %v4296_v10  ;;  %v4373_v7 = vld [vmem:[%s5896_s3 + $0x1a0] ss:$28 sps:$4 sm:$0xff]   ;;  %v4376_v10 = vld [vmem:[%s5896_s3 + $0x54c] ss:$28 sps:$4 sm:$0xff]  }
 0x19b   :  { %3190 = vmatpush1.bf16.msra.mxu0 %v4294_v12  ;;  %v4374_v12 = vld [vmem:[%s5896_s3 + $0x548] ss:$28 sps:$4 sm:$0xff]  }
 0x19c   :  { %3145 = vmatpush1.bf16.msra.mxu1 %v4291_v11  ;;  %3191 = vmatprep.subr.bf16.mxu0 %v4302_v14  ;;  %v4377_v11 = vld [vmem:[%s5896_s3 + $0x328] ss:$28 sps:$4 sm:$0xff]   ;;  %v4381_v14 = vld [vmem:[%s5896_s3 + $0x51c] ss:$28 sps:$4 sm:$0xff]  }
 0x19d   :  { %3146 = vmatprep.subr.bf16.mxu1 %v4299_v13  ;;  %v4378_v13 = vld [vmem:[%s5896_s3 + $0x168] ss:$28 sps:$4 sm:$0xff]  }
 0x19f   :  { %3192 = vmatpush1.bf16.msra.mxu0 %v4300_v17  ;;  %v4379_v17 = vld [vmem:[%s5896_s3 + $0x518] ss:$28 sps:$4 sm:$0xff]  }
 0x1a0   :  { %3147 = vmatpush1.bf16.msra.mxu1 %v4297_v15  ;;  %3193 = vmatprep.subr.bf16.mxu0 %v4308_v21  ;;  %v4382_v15 = vld [vmem:[%s5896_s3 + $0x2f0] ss:$28 sps:$4 sm:$0xff]   ;;  %v4387_v21 = vld [vmem:[%s5896_s3 + $0x2b8] ss:$28 sps:$4 sm:$0xff]  }
 0x1a1   :  { %3148 = vmatprep.subr.bf16.mxu1 %v4305_v18  ;;  %v4386_v18 = vld [vmem:[%s5896_s3 + $0x4e4] ss:$28 sps:$4 sm:$0xff]  }
 0x1a3   :  { %3194 = vmatpush1.bf16.msra.mxu0 %v4306_v23  ;;  %v4388_v23 = vld [vmem:[%s5896_s3 + $0xf8] ss:$28 sps:$4 sm:$0xff]  }
 0x1a4   :  { %3149 = vmatpush1.bf16.msra.mxu1 %v4303_v22  ;;  %3195 = vmatprep.subr.bf16.mxu0 %v4314_v25  ;;  %v4384_v22 = vld [vmem:[%s5896_s3 + $0x4e0] ss:$28 sps:$4 sm:$0xff]  }
 0x1a5   :  { %3150 = vmatprep.subr.bf16.mxu1 %v4311_v24  ;;  %v4391_v24 = vld [vmem:[%s5896_s3 + $0x4ac] ss:$28 sps:$4 sm:$0xff]   ;;  %v4392_v25 = vld [vmem:[%s5896_s3 + $0x280] ss:$28 sps:$4 sm:$0xff]  }
 0x1a7   :  { %3196 = vmatpush1.bf16.msra.mxu0 %v4312_v27  ;;  %v4393_v27 = vld [vmem:[%s5896_s3 + $0xc0] ss:$28 sps:$4 sm:$0xff]  }
 0x1a8   :  { %3151 = vmatpush1.bf16.msra.mxu1 %v4309_v26  ;;  %3197 = vmatprep.subr.bf16.mxu0 %v4320_v29  ;;  %v4389_v26 = vld [vmem:[%s5896_s3 + $0x4a8] ss:$28 sps:$4 sm:$0xff]  }
 0x1a9   :  { %3152 = vmatprep.subr.bf16.mxu1 %v4317_v28  ;;  %v4396_v28 = vld [vmem:[%s5896_s3 + $0x474] ss:$28 sps:$4 sm:$0xff]   ;;  %v4397_v29 = vld [vmem:[%s5896_s3 + $0x248] ss:$28 sps:$4 sm:$0xff]  }
 0x1ab   :  { %3198 = vmatpush1.bf16.msra.mxu0 %v4318_v9  ;;  %v4398_v9 = vld [vmem:[%s5896_s3 + $0x88] ss:$28 sps:$4 sm:$0xff]  }
 0x1ac   :  { %3153 = vmatpush1.bf16.msra.mxu1 %v4315_v30  ;;  %3199 = vmatprep.subr.bf16.mxu0 %v4326_v19  ;;  %v4394_v30 = vld [vmem:[%s5896_s3 + $0x470] ss:$28 sps:$4 sm:$0xff]  }
 0x1ad   :  { %3154 = vmatprep.subr.bf16.mxu1 %v4323_v16  ;;  %v4401_v16 = vld [vmem:[%s5896_s3 + $0x43c] ss:$28 sps:$4 sm:$0xff]   ;;  %v4402_v19 = vld [vmem:[%s5896_s3 + $0x210] ss:$28 sps:$4 sm:$0xff]  }
 0x1af   :  { %3200 = vmatpush2.bf16.msra.mxu0 %v4324_v52  ;;  %v4403_v52 = vld [vmem:[%s5896_s3 + $0x50] ss:$28 sps:$4 sm:$0xff]  }
 0x1b0   :  { %3155 = vmatpush1.bf16.msra.mxu1 %v4321_v20  ;;  %3201 = vmatprep.subr.bf16.mxu0 %v4332_v34  ;;  %v4399_v20 = vld [vmem:[%s5896_s3 + $0x438] ss:$28 sps:$4 sm:$0xff]  }
 0x1b1   :  { %3156 = vmatprep.subr.bf16.mxu1 %v4329_v33  ;;  %v4406_v33 = vld [vmem:[%s5896_s3 + $0x404] ss:$28 sps:$4 sm:$0xff]   ;;  %v4407_v34 = vld [vmem:[%s5896_s3 + $0x1d8] ss:$28 sps:$4 sm:$0xff]  }
 0x1b3   :  { %3202 = vmatpush2.bf16.msra.mxu0 %v4330_v8  ;;  %v4408_v8 = vld [vmem:[%s5896_s3 + $0x18] ss:$28 sps:$4 sm:$0xff]  }
 0x1b4   :  { %3157 = vmatpush1.bf16.msra.mxu1 %v4327_v35  ;;  %3203 = vmatprep.subr.bf16.mxu0 %v4338_v41  ;;  %v4404_v35 = vld [vmem:[%s5896_s3 + $0x400] ss:$28 sps:$4 sm:$0xff]   ;;  %v4409_v41 = vld [vmem:[%s5896_s3 + $0x3c8] ss:$28 sps:$4 sm:$0xff]  }
 0x1b5   :  { %3158 = vmatprep.subr.bf16.mxu1 %v4335_v37  ;;  %v4411_v37 = vld [vmem:[%s5896_s3 + $0x3cc] ss:$28 sps:$4 sm:$0xff]  }
 0x1b7   :  { %3204 = vmatpush2.bf16.msra.mxu0 %v4336_v43  ;;  %v4412_v43 = vld [vmem:[%s5896_s3 + $0x390] ss:$28 sps:$4 sm:$0xff]  }
 0x1b8   :  { %3159 = vmatpush2.bf16.msra.mxu1 %v4333_v42  ;;  %3205 = vmatprep.subr.bf16.mxu0 %v4344_v45  ;;  %v4414_v42 = vld [vmem:[%s5896_s3 + $0x394] ss:$28 sps:$4 sm:$0xff]  }
 0x1b9   :  { %3160 = vmatprep.subr.bf16.mxu1 %v4341_v44  ;;  %v4417_v44 = vld [vmem:[%s5896_s3 + $0x6dc] ss:$28 sps:$4 sm:$0xff]  }
 0x1ba   :  { %v4415_v45 = vld [vmem:[%s5896_s3 + $0x6d8] ss:$28 sps:$4 sm:$0xff]  }
 0x1bb   :  { %3206 = vmatpush2.bf16.msra.mxu0 %v4342_v47  ;;  %v4423_v47 = vld [vmem:[%s5896_s3 + $0x66c] ss:$28 sps:$4 sm:$0xff]  }
 0x1bc   :  { %3161 = vmatpush2.bf16.msra.mxu1 %v4339_v46  ;;  %3207 = vmatprep.subr.bf16.mxu0 %v4350_v48  ;;  %v4420_v46 = vld [vmem:[%s5896_s3 + $0x6a4] ss:$28 sps:$4 sm:$0xff]   ;;  %v4426_v48 = vld [vmem:[%s5896_s3 + $0x634] ss:$28 sps:$4 sm:$0xff]  }
 0x1bd   :  { %3162 = vmatprep.subr.bf16.mxu1 %v4347_v36  ;;  %v4421_v36 = vld [vmem:[%s5896_s3 + $0x668] ss:$28 sps:$4 sm:$0xff]  }
 0x1bf   :  { %3208 = vmatpush2.bf16.msra.mxu0 %v4348_v50  ;;  %v4429_v50 = vld [vmem:[%s5896_s3 + $0x5fc] ss:$28 sps:$4 sm:$0xff]  }
 0x1c0   :  { %3163 = vmatpush2.bf16.msra.mxu1 %v4345_v49  ;;  %3209 = vmatprep.subr.bf16.mxu0 %v4356_v53  ;;  %v4424_v49 = vld [vmem:[%s5896_s3 + $0x630] ss:$28 sps:$4 sm:$0xff]   ;;  %v4432_v53 = vld [vmem:[%s5896_s3 + $0x5c4] ss:$28 sps:$4 sm:$0xff]  }
 0x1c1   :  { %3164 = vmatprep.subr.bf16.mxu1 %v4353_v51  ;;  %v4427_v51 = vld [vmem:[%s5896_s3 + $0x5f8] ss:$28 sps:$4 sm:$0xff]  }
 0x1c3   :  { %3210 = vmatpush2.bf16.msra.mxu0 %v4354_v55  ;;  %v4435_v55 = vld [vmem:[%s5896_s3 + $0x58c] ss:$28 sps:$4 sm:$0xff]  }
 0x1c4   :  { %3165 = vmatpush2.bf16.msra.mxu1 %v4351_v54  ;;  %3211 = vmatprep.subr.bf16.mxu0 %v4362_v57  ;;  %v4430_v54 = vld [vmem:[%s5896_s3 + $0x5c0] ss:$28 sps:$4 sm:$0xff]   ;;  %v4438_v57 = vld [vmem:[%s5896_s3 + $0x554] ss:$28 sps:$4 sm:$0xff]  }
 0x1c5   :  { %3166 = vmatprep.subr.bf16.mxu1 %v4359_v56  ;;  %v4433_v56 = vld [vmem:[%s5896_s3 + $0x588] ss:$28 sps:$4 sm:$0xff]  }
 0x1c7   :  { %3212 = vmatpush2.bf16.msra.mxu0 %v4360_v60  ;;  %v4436_v60 = vld [vmem:[%s5896_s3 + $0x550] ss:$28 sps:$4 sm:$0xff]  }
 0x1c8   :  { %3167 = vmatpush2.bf16.msra.mxu1 %v4357_v58  ;;  %3213 = vmatprep.subr.bf16.mxu0 %v4368_v63  ;;  %v4439_v63 = vld [vmem:[%s5896_s3 + $0x6e0] ss:$28 sps:$4 sm:$0xff]  }
 0x1c9   :  { %3168 = vmatprep.subr.bf16.mxu1 %v4365_v62 }
 0x1cb   :  { %3214 = vmatpush2.bf16.msra.mxu0 %v4366_v1  ;;  %v4440_v1 = vld [vmem:[%s5896_s3 + $0x520] ss:$28 sps:$4 sm:$0xff]  }
 0x1cc   :  { %3169 = vmatpush2.bf16.msra.mxu1 %v4363_v0  ;;  %3795 = vmatprep.subr.bf16.mxu0 %v4372_v4  ;;  %v4441_v4 = vld [vmem:[%s5896_s3 + $0x6a8] ss:$28 sps:$4 sm:$0xff]  }
 0x1cd   :  { %3170 = vmatprep.subr.bf16.mxu1 %v4371_v2 }
 0x1ce   :  { %3216 = vmatmul.mubr.bf16.vlgmr.msra.gmra.mxu0 %v5370_v61 }
 0x1cf   :  { %3796 = vmatpush3.bf16.msra.mxu0 %v4373_v7  ;;  %3297 = vmatprep.mubr.bf16.mxu0 %v5365_v59  ;;  %v4383_v59 = vld [vmem:[%s5896_s3 + $0x130] ss:$28 sps:$4 sm:$0xff]  }
 0x1d0   :  { %3171 = vmatpush2.bf16.msra.mxu1 %v4369_v6  ;;  %3797 = vmatprep.subr.bf16.mxu0 %v4377_v11  ;;  %v4442_v6 = vld [vmem:[%s5896_s3 + $0x4e8] ss:$28 sps:$4 sm:$0xff]   ;;  %v4443_v7 = vld [vmem:[%s5896_s3 + $0x670] ss:$28 sps:$4 sm:$0xff]   ;;  %v4445_v11 = vld [vmem:[%s5896_s3 + $0x638] ss:$28 sps:$4 sm:$0xff]  }
 0x1d1   :  { %3172 = vmatprep.subr.bf16.mxu1 %v4376_v10  ;;  %v4444_v10 = vld [vmem:[%s5896_s3 + $0x4b0] ss:$28 sps:$4 sm:$0xff]  }
 0x1d3   :  { %3798 = vmatpush3.bf16.msra.mxu0 %v4378_v13  ;;  %v4448_v13 = vld [vmem:[%s5896_s3 + $0x440] ss:$28 sps:$4 sm:$0xff]  }
 0x1d4   :  { %3173 = vmatpush2.bf16.msra.mxu1 %v4374_v12  ;;  %3799 = vmatprep.subr.bf16.mxu0 %v4382_v15  ;;  %v4447_v12 = vld [vmem:[%s5896_s3 + $0x600] ss:$28 sps:$4 sm:$0xff]   ;;  %v4450_v15 = vld [vmem:[%s5896_s3 + $0x408] ss:$28 sps:$4 sm:$0xff]  }
 0x1d5   :  { %3224 = vmatprep.subr.bf16.mxu1 %v4381_v14  ;;  %v4449_v14 = vld [vmem:[%s5896_s3 + $0x5c8] ss:$28 sps:$4 sm:$0xff]  }
 0x1d7   :  { %3175 = vmatmul.mubr.bf16.vlgmr.msra.gmra.mxu1 %v5499_v5  ;;  %3800 = vmatpush3.bf16.msra.mxu0 %v4383_v59  ;;  %v4452_v59 = vld [vmem:[%s5896_s3 + $0x3d0] ss:$28 sps:$4 sm:$0xff]  }
 0x1d8   :  { %3225 = vmatpush1.bf16.msra.mxu1 %v4379_v17  ;;  %3256 = vmatprep.mubr.bf16.mxu1 %v5494_v3  ;;  %v4451_v17 = vld [vmem:[%s5896_s3 + $0x590] ss:$28 sps:$4 sm:$0xff]  }
 0x1d9   :  { %3226 = vmatprep.subr.bf16.mxu1 %v4386_v18  ;;  %3801 = vmatprep.subr.bf16.mxu0 %v4387_v21  ;;  %v4453_v18 = vld [vmem:[%s5896_s3 + $0x558] ss:$28 sps:$4 sm:$0xff]  }
 0x1da   :  { %v4454_v21 = vld [vmem:[%s5896_s3 + $0x398] ss:$28 sps:$4 sm:$0xff]  }
 0x1db   :  { %3802 = vmatpush3.bf16.msra.mxu0 %v4388_v23 }
 0x1dc   :  { %3227 = vmatpush1.bf16.msra.mxu1 %v4384_v22  ;;  %3803 = vmatprep.subr.bf16.mxu0 %v4392_v25  ;;  %v1830_v22 = vld [vmem:[%s5897_s4] sm:$0x7f] }
 0x1dd   :  { %3228 = vmatprep.subr.bf16.mxu1 %v4391_v24  ;;  %v1835_v25 = vrot.slane %v1830_v22, %v236_v39  ;;  %v1843_v39 = vrot.slane %v1830_v22, %v244_v31 }
 0x1df   :  { %3804 = vmatpush3.bf16.msra.mxu0 %v4393_v27  ;;  %v1839_v27 = vrot.slane %v1830_v22, %v240_v40  ;;  %v1847_v40 = vrot.slane %v1830_v22, %v248_v32  ;;  %v1850_v32 = vsub.s32 4, %v5348_v38 }
 0x1e0   :  { %3229 = vmatpush1.bf16.msra.mxu1 %v4389_v26  ;;  %3805 = vmatprep.subr.bf16.mxu0 %v4397_v29 }
 0x1e1   :  { %3230 = vmatprep.subr.bf16.mxu1 %v4396_v28 }
 0x1e3   :  { %3806 = vmatpush3.bf16.msra.mxu0 %v4398_v9 }
 0x1e4   :  { %3231 = vmatpush1.bf16.msra.mxu1 %v4394_v30  ;;  %3807 = vmatprep.subr.bf16.mxu0 %v4402_v19 }
 0x1e5   :  { %3232 = vmatprep.subr.bf16.mxu1 %v4401_v16 }
 0x1e7   :  { %3808 = vmatpush3.bf16.msra.mxu0 %v4403_v52 }
 0x1e8   :  { %3233 = vmatpush1.bf16.msra.mxu1 %v4399_v20  ;;  %3809 = vmatprep.subr.bf16.mxu0 %v4407_v34 }
 0x1e9   :  { %3234 = vmatprep.subr.bf16.mxu1 %v4406_v33 }
 0x1eb   :  { %3810 = vmatpush3.bf16.msra.mxu0 %v4408_v8 }
 0x1ec   :  { %3235 = vmatpush1.bf16.msra.mxu1 %v4404_v35 }
 0x1ed   :  { %3236 = vmatprep.subr.bf16.mxu1 %v4411_v37 }
 0x1ee   :  { %3298 = vmatmul.mubr.bf16.vlgmr.msra.gmra.mxu0 %v5370_v61  ;;  %v4418_v61 = vld [vmem:[%s5896_s3 + $0x6a0] ss:$28 sps:$4 sm:$0xff]  }
 0x1f0   :  { %3237 = vmatpush1.bf16.msra.mxu1 %v4409_v41 }
 0x1f1   :  { %3238 = vmatprep.subr.bf16.mxu1 %v4414_v42 }
 0x1f4   :  { %3239 = vmatpush1.bf16.msra.mxu1 %v4412_v43 }
 0x1f5   :  { %3240 = vmatprep.subr.bf16.mxu1 %v4417_v44 }
 0x1f8   :  { %3241 = vmatpush2.bf16.msra.mxu1 %v4415_v45 }
 0x1f9   :  { %3242 = vmatprep.subr.bf16.mxu1 %v4420_v46 }
 0x1fc   :  { %3243 = vmatpush2.bf16.msra.mxu1 %v4418_v61 }
 0x1fd   :  { %3244 = vmatprep.subr.bf16.mxu1 %v4423_v47 }
 0x200   :  { %3245 = vmatpush2.bf16.msra.mxu1 %v4421_v36 }
 0x201   :  { %3246 = vmatprep.subr.bf16.mxu1 %v4426_v48 }
 0x204   :  { %3247 = vmatpush2.bf16.msra.mxu1 %v4424_v49 }
 0x205   :  { %3248 = vmatprep.subr.bf16.mxu1 %v4429_v50 }
 0x208   :  { %3249 = vmatpush2.bf16.msra.mxu1 %v4427_v51 }
 0x209   :  { %3250 = vmatprep.subr.bf16.mxu1 %v4432_v53 }
 0x20c   :  { %3251 = vmatpush2.bf16.msra.mxu1 %v4430_v54 }
 0x20d   :  { %3252 = vmatprep.subr.bf16.mxu1 %v4435_v55  ;;  %v1854_v55 = vsub.s32 5, %v5348_v38 }
 0x20e   :  { %v3053_v58 = vpop.f32.mrf.mxu0 }
 0x20f   :  { %v3054_v29 = vadd.f32 %v3053_v58, %v1835_v25 }
 0x210   :  { %3253 = vmatpush2.bf16.msra.mxu1 %v4433_v56  ;;  %v3055_v62 = vpop.f32.mrf.mxu0  ;;  %v1851_v56 = vrot.slane %v1830_v22, %v1850_v32 }
 0x211   :  { %3254 = vmatprep.subr.bf16.mxu1 %v4438_v57  ;;  %v3056_v9 = vadd.f32 %v3055_v62, %v1839_v27  ;;  %v1855_v57 = vrot.slane %v1830_v22, %v1854_v55 }
 0x212   :  { %v3057_v0 = vpop.f32.mrf.mxu0 }
 0x214   :  { %3255 = vmatpush2.bf16.msra.mxu1 %v4436_v60  ;;  %v3058_v2 = vpop.f32.mrf.mxu0 }
 0x215   :  { %3817 = vmatprep.subr.bf16.mxu1 %v4439_v63 }
 0x217   :  { %3257 = vmatmul.mubr.bf16.vlgmr.msra.gmra.mxu1 %v5499_v5 }
 0x218   :  { %3818 = vmatpush3.bf16.msra.mxu1 %v4440_v1  ;;  %3337 = vmatprep.mubr.bf16.mxu1 %v5494_v3  ;;  %v4446_v3 = vld [vmem:[%s5896_s3 + $0x478] ss:$28 sps:$4 sm:$0xff]   ;;  %s4478_s3 = smov [#allocation2]  }
 0x219   :  { %3819 = vmatprep.subr.bf16.mxu1 %v4441_v4  ;;  %s3365_s4 = sshll.u32 %s4478_s3, 4  ;;  %s3366_s4 = int_to_ptr.vmem [resolvable:$true] %s3365_s4 }
 0x21a   :  { %s4455_s1 = scalar_lea.vmem %s3366_s4, 896  ;;  %p4460_p1 = scmp.lt.s32.totalorder %s3366_s4, %s3366_s4 }
 0x21b   :  { %p4456_p0 = scmp.ne.s32.totalorder %s3366_s4, %s4455_s1  ;;  %p4461_p2 = scmp.lt.s32.totalorder %s4455_s1, %s4455_s1 }
 0x21c   :  { %3820 = vmatpush3.bf16.msra.mxu1 %v4442_v6 }
 0x21d   :  { %3821 = vmatprep.subr.bf16.mxu1 %v4443_v7  ;;  %p4462_p3 = por %p4461_p2, %p4460_p1 }
 0x21f   :  { %p4463_p4 = pnand %p4462_p3, %p4456_p0 }
 0x220   :  { %3822 = vmatpush3.bf16.msra.mxu1 %v4444_v10  ;;  %v1858_v10 = vsub.s32 6, %v5348_v38 }
 0x221   :  { %3823 = vmatprep.subr.bf16.mxu1 %v4445_v11 }
 0x222   :  { %v1859_v11 = vrot.slane %v1830_v22, %v1858_v10 }
 0x224   :  { %3824 = vmatpush3.bf16.msra.mxu1 %v4446_v3 }
 0x225   :  { %3825 = vmatprep.subr.bf16.mxu1 %v4447_v12 }
 0x228   :  { %3826 = vmatpush3.bf16.msra.mxu1 %v4448_v13 }
 0x229   :  { %3827 = vmatprep.subr.bf16.mxu1 %v4449_v14 }
 0x22c   :  { %3828 = vmatpush3.bf16.msra.mxu1 %v4450_v15 }
 0x22d   :  { %3829 = vmatprep.subr.bf16.mxu1 %v4451_v17 }
 0x230   :  { %3830 = vmatpush3.bf16.msra.mxu1 %v4452_v59 }
 0x231   :  { %3831 = vmatprep.subr.bf16.mxu1 %v4453_v18 }
 0x234   :  { %3832 = vmatpush3.bf16.msra.mxu1 %v4454_v21 }
 0x237   :  { %3338 = vmatmul.mubr.bf16.vlgmr.msra.gmra.mxu1 %v5499_v5 }
 0x24e   :  { %v3135_v23 = vpop.f32.mrf.mxu0 }
 0x24f   :  { %v3136_v41 = vadd.f32 %v3135_v23, %v1843_v39 }
 0x250   :  { %v3137_v24 = vpop.f32.mrf.mxu0 }
 0x251   :  { %v3138_v44 = vadd.f32 %v3137_v24, %v1847_v40 }
 0x252   :  { %v3139_v26 = vpop.f32.mrf.mxu0 }
 0x254   :  { %v3140_v28 = vpop.f32.mrf.mxu0 }
 0x257   :  { %v3094_v30 = vpop.f32.mrf.mxu1 }
 0x258   :  { %v3095_v16 = vadd.f32 %v3094_v30, %v3054_v29 }
 0x259   :  { %v3096_v19 = vpop.f32.mrf.mxu1 }
 0x25a   :  { %v3345_v5 = vmax.f32 %v3095_v16, 0.0  ;;  %v3097_v20 = vadd.f32 %v3096_v19, %v3056_v9 }
 0x25b   :  { %v3098_v52 = vpop.f32.mrf.mxu1 }
 0x25c   :  { %3352 = vst [vmem:[#allocation2] sm:$0xff] %v3345_v5  ;;  %v3346_v33 = vmax.f32 %v3097_v20, 0.0 }
 0x25d   :  { %v3099_v34 = vpop.f32.mrf.mxu1 }
 0x25e   :  { %3353 = vst [vmem:[#allocation2 + $0x8] sm:$0xff] %v3346_v33 }
 0x28e   :  { %v3217_v35 = vpop.f32.mrf.mxu0 }
 0x28f   :  { %v3218_v58 = vadd.f32 %v3217_v35, %v1851_v56 }
 0x290   :  { %v3219_v8 = vpop.f32.mrf.mxu0 }
 0x291   :  { %v3220_v62 = vadd.f32 %v3219_v8, %v1855_v57 }
 0x292   :  { %v3221_v37 = vpop.f32.mrf.mxu0 }
 0x294   :  { %v3222_v42 = vpop.f32.mrf.mxu0 }
 0x297   :  { %v3176_v43 = vpop.f32.mrf.mxu1 }
 0x298   :  { %v3177_v45 = vadd.f32 %v3176_v43, %v3136_v41 }
 0x299   :  { %v3178_v46 = vpop.f32.mrf.mxu1 }
 0x29a   :  { %v3347_v61 = vmax.f32 %v3177_v45, 0.0  ;;  %v3179_v47 = vadd.f32 %v3178_v46, %v3138_v44 }
 0x29b   :  { %v3180_v36 = vpop.f32.mrf.mxu1 }
 0x29c   :  { %3354 = vst [vmem:[#allocation2 + $0x10] sm:$0xff] %v3347_v61  ;;  %v3348_v48 = vmax.f32 %v3179_v47, 0.0 }
 0x29d   :  { %v3181_v49 = vpop.f32.mrf.mxu1 }
 0x29e   :  { %3355 = vst [vmem:[#allocation2 + $0x18] sm:$0xff] %v3348_v48 }
 0x2ae   :  { %v3811_v50 = vpop.f32.mrf.mxu0 }
 0x2b0   :  { %v3812_v31 = vpop.f32.mrf.mxu0 }
 0x2b1   :  { %v3813_v51 = vadd.f32 %v3812_v31, %v3811_v50 }
 0x2b2   :  { %v3814_v53 = vpop.f32.mrf.mxu0 }
 0x2b3   :  { %v3300_v13 = vadd.f32 %v3813_v51, %v1859_v11 }
 0x2b4   :  { %v3815_v54 = vpop.f32.mrf.mxu0 }
 0x2d7   :  { %v3258_v60 = vpop.f32.mrf.mxu1 }
 0x2d8   :  { %v3259_v63 = vadd.f32 %v3258_v60, %v3218_v58 }
 0x2d9   :  { %v3260_v0 = vpop.f32.mrf.mxu1 }
 0x2da   :  { %v3349_v1 = vmax.f32 %v3259_v63, 0.0  ;;  %v3261_v2 = vadd.f32 %v3260_v0, %v3220_v62 }
 0x2db   :  { %v3262_v4 = vpop.f32.mrf.mxu1 }
 0x2dc   :  { %3356 = vst [vmem:[#allocation2 + $0x20] sm:$0xff] %v3349_v1  ;;  %v3350_v6 = vmax.f32 %v3261_v2, 0.0 }
 0x2dd   :  { %v3263_v7 = vpop.f32.mrf.mxu1 }
 0x2de   :  { %3357 = vst [vmem:[#allocation2 + $0x28] sm:$0xff] %v3350_v6 }
 0x2f7   :  { %v3833_v3 = vpop.f32.mrf.mxu1 }
 0x2f9   :  { %v3834_v12 = vpop.f32.mrf.mxu1 }
 0x2fa   :  { %v3835_v14 = vadd.f32 %v3834_v12, %v3833_v3 }
 0x2fb   :  { %v3836_v15 = vpop.f32.mrf.mxu1 }
 0x2fc   :  { %v3340_v17 = vadd.f32 %v3835_v14, %v3300_v13 }
 0x2fd   :  { %v3837_v59 = vpop.f32.mrf.mxu1 }
 0x2fe   :  { %v3351_v18 = vmax.f32 %v3340_v17, 0.0 }
 0x300   :  { %3358 = vst.msk [vmem:[#allocation2 + $0x30] sm:$0xff] %vm1234_vm0, %v3351_v18 }
 0x301   :  { %4466 = shalt.err (!%p4463_p4)
}
 0x302   :  { %3368 = dma.vmem_to_hbm [thread:$0]  %s3366_s4, 896, %s5898_s5, [#allocation3]  }
 0x303   :  { %4475 = dma.done.wait [#allocation3], 896  }
 0x304   :  { %4476 = vsyncadd [#allocation3], 4294966400 }
 0x305   :  { %3372 = vsyncpa [#allocation3], 1 }

</bundles_post_ra>
